<compile_context>
chip_gen: v7x
topology: tpu7x:2x2x1
jax: 0.10.0
libtpu: 0.0.40
codegen_flags: <defaults>
</compile_context>

<pallas_src>
import functools

import jax
import jax.numpy as jnp
from jax.experimental import pallas as pl
from jax.experimental.pallas import tpu as pltpu


def _spatial_attention_kernel(x_ref, w_ref, s_ref, col_ref, out_ref, pf_ref,
                              *, W, LC):
    # x_ref:   (TB, C, L=H*W) block in VMEM (lane-dense)
    # w_ref:   (98,) flattened 7x7x2 conv weights in SMEM, order [ci, di, dj]
    # s_ref:   (2,)  = [bias, temperature] in SMEM
    # col_ref: (1, L) int32: column index (flat % W) per output lane
    # pf_ref:  (2, SUB, G) VMEM scratch: flat zero-guarded pooled planes per
    #          sublane-batched row chunk, G = (H+6)*W + 6
    TB, C, L = x_ref.shape
    G = pf_ref.shape[-1]
    SUB = pf_ref.shape[1]
    interior = 3 * W + 3                       # flat offset of pool[0, 0]

    bias = s_ref[0]
    inv_temp = 1.0 / s_ref[1]
    inv_c = 1.0 / C

    # Hoist the 98 conv-weight scalar reads (SMEM) once per grid step.
    wts = [[[w_ref[ci * 49 + di * 7 + dj] for dj in range(7)]
            for di in range(7)] for ci in range(2)]

    # Zero only the guard bands (3 padded rows above/below + 3-lane end
    # guards); the interior [interior, interior+L) is fully overwritten below.
    for ci in range(2):
        pf_ref[ci, :, 0:interior] = jnp.zeros((SUB, interior), jnp.float32)
        pf_ref[ci, :, interior + L:G] = jnp.zeros(
            (SUB, G - interior - L), jnp.float32)

    CC = min(C, 32)                            # channel streaming chunk
    res_dtype = (out_ref.dtype
                 if jnp.dtype(out_ref.dtype) == jnp.dtype(jnp.bfloat16)
                 else jnp.float32)

    for r0 in range(0, TB, SUB):               # batch rows, 8 per sublane slab
        rows = min(SUB, TB - r0)

        # ---- channel pooling: stream x, fill pooled rows of the scratch ----
        for l0 in range(0, L, LC):
            lc = min(LC, L - l0)
            for r in range(rows):
                b = r0 + r
                s_acc = None
                m_acc = None
                for c0 in range(0, C, CC):
                    cc = min(CC, C - c0)
                    xb = x_ref[b, c0:c0 + cc, l0:l0 + lc].astype(jnp.float32)
                    ps = jnp.sum(xb, axis=0, keepdims=True)
                    pm = jnp.max(xb, axis=0, keepdims=True)
                    s_acc = ps if s_acc is None else s_acc + ps
                    m_acc = pm if m_acc is None else jnp.maximum(m_acc, pm)
                pf_ref[0, r:r + 1, interior + l0:interior + l0 + lc] = s_acc * inv_c
                pf_ref[1, r:r + 1, interior + l0:interior + l0 + lc] = m_acc

        # ---- 7x7 conv + sigmoid + fused residual, lane-chunked ----
        for l0 in range(0, L, LC):
            lc = min(LC, L - l0)
            col = col_ref[0:1, l0:l0 + lc]                 # (1, lc) column idx

            total = None
            for dj in range(7):
                a = None
                for ci in range(2):
                    for di in range(7):
                        off = di * W + dj + l0
                        win = pf_ref[ci, 0:rows, off:off + lc]   # (rows, lc)
                        t = wts[ci][di][dj] * win
                        a = t if a is None else a + t
                # Zero columns where the flat horizontal shift wrapped across
                # rows (valid iff 0 <= w + dj - 3 < W); dj == 3 never wraps.
                if dj < 3:
                    a = jnp.where(col >= (3 - dj), a, 0.0)
                elif dj > 3:
                    a = jnp.where(col < (W + 3 - dj), a, 0.0)
                total = a if total is None else total + a

            att = jax.nn.sigmoid((total + bias) * inv_temp)    # (rows, lc) f32
            gain = (1.0 + att).astype(res_dtype)               # fused residual

            # out = x * (1 + att): dense (C, lc) slabs, re-reading x from VMEM.
            for r in range(rows):
                b = r0 + r
                g = gain[r:r + 1, :]                            # (1, lc)
                xs = x_ref[b, :, l0:l0 + lc].astype(res_dtype)  # (C, lc)
                out_ref[b, :, l0:l0 + lc] = (xs * g).astype(out_ref.dtype)


def _vmem_capacity_bytes():
    """Physical VMEM per TensorCore (128 MiB v5e/v6e, 64 MiB v7x)."""
    try:
        cap = int(pltpu.get_tpu_info().vmem_capacity_bytes)
        if cap > 0:
            return cap
    except Exception:
        pass
    return 64 << 20            # conservative (v7x per-TC) fallback


def _pick_tb(B, C, L, G, itemsize, capacity):
    """Largest batch tile (dividing B, capped for trace size) whose x/out
    blocks + scratch fit a per-generation VMEM budget; keep >= 2 grid steps
    (v7x megacore) only when each step can still fill 8 sublane rows."""
    budget = int(capacity * 0.55)
    rup = lambda v, m: -(-v // m) * m

    def footprint(tb):
        blocks = 4 * tb * C * L * itemsize          # x + out, double-buffered
        scratch = 2 * 8 * rup(G, 128) * 4           # pooled-plane scratch
        colv = 2 * 8 * rup(L, 128) * 4              # column-index input block
        return blocks + scratch + colv + (2 << 20)  # headroom for temporaries

    tb = 1
    for d in range(1, min(B, 64) + 1):              # cap bounds kernel unroll
        if B % d == 0 and footprint(d) <= budget:
            tb = d
    if B // tb == 1 and B >= 16:                    # v7x: give both TCs work
        half = B // 2
        while half > 8 and B % half != 0:
            half -= 1
        if half >= 8 and B % half == 0:
            tb = half
    return max(tb, 1)


@functools.partial(jax.jit, static_argnames=("tb",))
def spatial_attention(x, spatial_w, spatial_b, temperature, *, tb=None):
    """x: (B, C, H, W); spatial_w: (1, 2, 7, 7); spatial_b: (1,); temperature: (1,)."""
    B, C, H, W = x.shape
    L = H * W
    G = (H + 6) * W + 6                    # flat padded pooled-plane length

    capacity = _vmem_capacity_bytes()
    if tb is None:
        tb = _pick_tb(B, C, L, G, jnp.dtype(x.dtype).itemsize, capacity)
    grid = (B // tb,)
    SUB = min(tb, 8)                       # sublane batch per conv slab
    LC = min(L, 512)                       # lane chunk for the attention phase

    # Lane-dense views for the heavy x/out path (free metadata reshape).
    x_flat = x.reshape(B, C, L)
    w_flat = spatial_w.reshape(-1).astype(jnp.float32)                         # (98,)
    scalars = jnp.concatenate(
        [spatial_b.reshape(-1), temperature.reshape(-1)]).astype(jnp.float32)  # (2,)
    col_ids = (jnp.arange(L, dtype=jnp.int32) % W).reshape(1, L)               # (1, L)

    kernel = functools.partial(_spatial_attention_kernel, W=W, LC=LC)

    out_flat = pl.pallas_call(
        kernel,
        out_shape=jax.ShapeDtypeStruct((B, C, L), x.dtype),
        grid=grid,
        in_specs=[
            pl.BlockSpec((tb, C, L), lambda b: (b, 0, 0)),
            pl.BlockSpec(memory_space=pltpu.MemorySpace.SMEM),
            pl.BlockSpec(memory_space=pltpu.MemorySpace.SMEM),
            pl.BlockSpec((1, L), lambda b: (0, 0)),
        ],
        out_specs=pl.BlockSpec((tb, C, L), lambda b: (b, 0, 0)),
        scratch_shapes=[pltpu.VMEM((2, SUB, G), jnp.float32)],
        compiler_params=pltpu.CompilerParams(
            dimension_semantics=("parallel",),
            vmem_limit_bytes=int(capacity * 0.8)),
    )(x_flat, w_flat, scalars, col_ids)

    return out_flat.reshape(B, C, H, W)


def spatial_attention_ref(x, spatial_w, spatial_b, temperature):
    """Pure-JAX reference mirroring the PyTorch forward."""
    avg_pool = jnp.mean(x, axis=1, keepdims=True)
    max_pool = jnp.max(x, axis=1, keepdims=True)
    pool_concat = jnp.concatenate([avg_pool, max_pool], axis=1)   # (B, 2, H, W)
    att = jax.lax.conv_general_dilated(
        pool_concat, spatial_w, window_strides=(1, 1), padding=((3, 3), (3, 3)),
        dimension_numbers=("NCHW", "OIHW", "NCHW"))
    att = att + spatial_b.reshape(1, 1, 1, 1)
    att = jax.nn.sigmoid(att / temperature.reshape(1, 1, 1, 1))
    return x + x * att


if __name__ == "__main__":
    key = jax.random.PRNGKey(0)
    k_x, k_w, k_b, k_cr = jax.random.split(key, 4)

    B, C, H, W = 2, 4, 16, 16
    x = jax.random.normal(k_x, (B, C, H, W), dtype=jnp.float32)

    # Parameters (deterministic synthetic init; shapes per nn.Module.__init__).
    spatial_w = jax.random.normal(k_w, (1, 2, 7, 7), dtype=jnp.float32) * 0.1
    spatial_b = jax.random.normal(k_b, (1,), dtype=jnp.float32) * 0.1
    temperature = jnp.ones((1,), dtype=jnp.float32)
    # channel_reduce params exist in __init__ but are unused in forward():
    reduced_channels = max(C // 8, 16)
    _channel_reduce_w = jax.random.normal(
        k_cr, (reduced_channels, C, 1, 1), dtype=jnp.float32) * 0.1  # unused

    out = spatial_attention(x, spatial_w, spatial_b, temperature)
    out = jax.block_until_ready(out)

    ref = spatial_attention_ref(x, spatial_w, spatial_b, temperature)
    assert out.shape == x.shape and out.dtype == x.dtype
    assert jnp.allclose(out, ref, atol=1e-4, rtol=1e-4), float(
        jnp.max(jnp.abs(out - ref)))

    print("KERNEL_OK")
</pallas_src>

<mosaic_0001>
module attributes {stable_mosaic.version = 11 : i64} {
  func.func @_spatial_attention_kernel(%arg0: i32, %arg1: memref<2x4x256xf32, #tpu.memory_space<vmem>>, %arg2: memref<98xf32, #tpu.memory_space<smem>>, %arg3: memref<2xf32, #tpu.memory_space<smem>>, %arg4: memref<1x256xi32, #tpu.memory_space<vmem>>, %arg5: memref<2x4x256xf32, #tpu.memory_space<vmem>>, %arg6: memref<2x2x358xf32, #tpu.memory_space<vmem>>) attributes {dimension_semantics = [#tpu.dimension_semantics<parallel>], iteration_bounds = array<i64: 1>, scalar_prefetch = 0 : i64, scratch_operands = 1 : i64, tpu.core_type = #tpu.core_type<tc>, window_params = [{transform_indices = @transform_0, window_bounds = array<i64: 2, 4, 256>}, {transform_indices = @transform_1, window_bounds = array<i64: 98>}, {transform_indices = @transform_2, window_bounds = array<i64: 2>}, {pipeline_mode = #tpu.pipeline_mode<synchronous>, transform_indices = @transform_3, window_bounds = array<i64: 1, 256>}, {transform_indices = @transform_4, window_bounds = array<i64: 2, 4, 256>}]} {
    %c0 = arith.constant 0 : index
    %0 = memref.load %arg3[%c0] : memref<2xf32, #tpu.memory_space<smem>>
    %c1 = arith.constant 1 : index
    %1 = memref.load %arg3[%c1] : memref<2xf32, #tpu.memory_space<smem>>
    %cst = arith.constant 1.000000e+00 : f32
    %2 = arith.divf %cst, %1 : f32
    %c0_0 = arith.constant 0 : index
    %3 = memref.load %arg2[%c0_0] : memref<98xf32, #tpu.memory_space<smem>>
    %c1_1 = arith.constant 1 : index
    %4 = memref.load %arg2[%c1_1] : memref<98xf32, #tpu.memory_space<smem>>
    %c2 = arith.constant 2 : index
    %5 = memref.load %arg2[%c2] : memref<98xf32, #tpu.memory_space<smem>>
    %c3 = arith.constant 3 : index
    %6 = memref.load %arg2[%c3] : memref<98xf32, #tpu.memory_space<smem>>
    %c4 = arith.constant 4 : index
    %7 = memref.load %arg2[%c4] : memref<98xf32, #tpu.memory_space<smem>>
    %c5 = arith.constant 5 : index
    %8 = memref.load %arg2[%c5] : memref<98xf32, #tpu.memory_space<smem>>
    %c6 = arith.constant 6 : index
    %9 = memref.load %arg2[%c6] : memref<98xf32, #tpu.memory_space<smem>>
    %c7 = arith.constant 7 : index
    %10 = memref.load %arg2[%c7] : memref<98xf32, #tpu.memory_space<smem>>
    %c8 = arith.constant 8 : index
    %11 = memref.load %arg2[%c8] : memref<98xf32, #tpu.memory_space<smem>>
    %c9 = arith.constant 9 : index
    %12 = memref.load %arg2[%c9] : memref<98xf32, #tpu.memory_space<smem>>
    %c10 = arith.constant 10 : index
    %13 = memref.load %arg2[%c10] : memref<98xf32, #tpu.memory_space<smem>>
    %c11 = arith.constant 11 : index
    %14 = memref.load %arg2[%c11] : memref<98xf32, #tpu.memory_space<smem>>
    %c12 = arith.constant 12 : index
    %15 = memref.load %arg2[%c12] : memref<98xf32, #tpu.memory_space<smem>>
    %c13 = arith.constant 13 : index
    %16 = memref.load %arg2[%c13] : memref<98xf32, #tpu.memory_space<smem>>
    %c14 = arith.constant 14 : index
    %17 = memref.load %arg2[%c14] : memref<98xf32, #tpu.memory_space<smem>>
    %c15 = arith.constant 15 : index
    %18 = memref.load %arg2[%c15] : memref<98xf32, #tpu.memory_space<smem>>
    %c16 = arith.constant 16 : index
    %19 = memref.load %arg2[%c16] : memref<98xf32, #tpu.memory_space<smem>>
    %c17 = arith.constant 17 : index
    %20 = memref.load %arg2[%c17] : memref<98xf32, #tpu.memory_space<smem>>
    %c18 = arith.constant 18 : index
    %21 = memref.load %arg2[%c18] : memref<98xf32, #tpu.memory_space<smem>>
    %c19 = arith.constant 19 : index
    %22 = memref.load %arg2[%c19] : memref<98xf32, #tpu.memory_space<smem>>
    %c20 = arith.constant 20 : index
    %23 = memref.load %arg2[%c20] : memref<98xf32, #tpu.memory_space<smem>>
    %c21 = arith.constant 21 : index
    %24 = memref.load %arg2[%c21] : memref<98xf32, #tpu.memory_space<smem>>
    %c22 = arith.constant 22 : index
    %25 = memref.load %arg2[%c22] : memref<98xf32, #tpu.memory_space<smem>>
    %c23 = arith.constant 23 : index
    %26 = memref.load %arg2[%c23] : memref<98xf32, #tpu.memory_space<smem>>
    %c24 = arith.constant 24 : index
    %27 = memref.load %arg2[%c24] : memref<98xf32, #tpu.memory_space<smem>>
    %c25 = arith.constant 25 : index
    %28 = memref.load %arg2[%c25] : memref<98xf32, #tpu.memory_space<smem>>
    %c26 = arith.constant 26 : index
    %29 = memref.load %arg2[%c26] : memref<98xf32, #tpu.memory_space<smem>>
    %c27 = arith.constant 27 : index
    %30 = memref.load %arg2[%c27] : memref<98xf32, #tpu.memory_space<smem>>
    %c28 = arith.constant 28 : index
    %31 = memref.load %arg2[%c28] : memref<98xf32, #tpu.memory_space<smem>>
    %c29 = arith.constant 29 : index
    %32 = memref.load %arg2[%c29] : memref<98xf32, #tpu.memory_space<smem>>
    %c30 = arith.constant 30 : index
    %33 = memref.load %arg2[%c30] : memref<98xf32, #tpu.memory_space<smem>>
    %c31 = arith.constant 31 : index
    %34 = memref.load %arg2[%c31] : memref<98xf32, #tpu.memory_space<smem>>
    %c32 = arith.constant 32 : index
    %35 = memref.load %arg2[%c32] : memref<98xf32, #tpu.memory_space<smem>>
    %c33 = arith.constant 33 : index
    %36 = memref.load %arg2[%c33] : memref<98xf32, #tpu.memory_space<smem>>
    %c34 = arith.constant 34 : index
    %37 = memref.load %arg2[%c34] : memref<98xf32, #tpu.memory_space<smem>>
    %c35 = arith.constant 35 : index
    %38 = memref.load %arg2[%c35] : memref<98xf32, #tpu.memory_space<smem>>
    %c36 = arith.constant 36 : index
    %39 = memref.load %arg2[%c36] : memref<98xf32, #tpu.memory_space<smem>>
    %c37 = arith.constant 37 : index
    %40 = memref.load %arg2[%c37] : memref<98xf32, #tpu.memory_space<smem>>
    %c38 = arith.constant 38 : index
    %41 = memref.load %arg2[%c38] : memref<98xf32, #tpu.memory_space<smem>>
    %c39 = arith.constant 39 : index
    %42 = memref.load %arg2[%c39] : memref<98xf32, #tpu.memory_space<smem>>
    %c40 = arith.constant 40 : index
    %43 = memref.load %arg2[%c40] : memref<98xf32, #tpu.memory_space<smem>>
    %c41 = arith.constant 41 : index
    %44 = memref.load %arg2[%c41] : memref<98xf32, #tpu.memory_space<smem>>
    %c42 = arith.constant 42 : index
    %45 = memref.load %arg2[%c42] : memref<98xf32, #tpu.memory_space<smem>>
    %c43 = arith.constant 43 : index
    %46 = memref.load %arg2[%c43] : memref<98xf32, #tpu.memory_space<smem>>
    %c44 = arith.constant 44 : index
    %47 = memref.load %arg2[%c44] : memref<98xf32, #tpu.memory_space<smem>>
    %c45 = arith.constant 45 : index
    %48 = memref.load %arg2[%c45] : memref<98xf32, #tpu.memory_space<smem>>
    %c46 = arith.constant 46 : index
    %49 = memref.load %arg2[%c46] : memref<98xf32, #tpu.memory_space<smem>>
    %c47 = arith.constant 47 : index
    %50 = memref.load %arg2[%c47] : memref<98xf32, #tpu.memory_space<smem>>
    %c48 = arith.constant 48 : index
    %51 = memref.load %arg2[%c48] : memref<98xf32, #tpu.memory_space<smem>>
    %c49 = arith.constant 49 : index
    %52 = memref.load %arg2[%c49] : memref<98xf32, #tpu.memory_space<smem>>
    %c50 = arith.constant 50 : index
    %53 = memref.load %arg2[%c50] : memref<98xf32, #tpu.memory_space<smem>>
    %c51 = arith.constant 51 : index
    %54 = memref.load %arg2[%c51] : memref<98xf32, #tpu.memory_space<smem>>
    %c52 = arith.constant 52 : index
    %55 = memref.load %arg2[%c52] : memref<98xf32, #tpu.memory_space<smem>>
    %c53 = arith.constant 53 : index
    %56 = memref.load %arg2[%c53] : memref<98xf32, #tpu.memory_space<smem>>
    %c54 = arith.constant 54 : index
    %57 = memref.load %arg2[%c54] : memref<98xf32, #tpu.memory_space<smem>>
    %c55 = arith.constant 55 : index
    %58 = memref.load %arg2[%c55] : memref<98xf32, #tpu.memory_space<smem>>
    %c56 = arith.constant 56 : index
    %59 = memref.load %arg2[%c56] : memref<98xf32, #tpu.memory_space<smem>>
    %c57 = arith.constant 57 : index
    %60 = memref.load %arg2[%c57] : memref<98xf32, #tpu.memory_space<smem>>
    %c58 = arith.constant 58 : index
    %61 = memref.load %arg2[%c58] : memref<98xf32, #tpu.memory_space<smem>>
    %c59 = arith.constant 59 : index
    %62 = memref.load %arg2[%c59] : memref<98xf32, #tpu.memory_space<smem>>
    %c60 = arith.constant 60 : index
    %63 = memref.load %arg2[%c60] : memref<98xf32, #tpu.memory_space<smem>>
    %c61 = arith.constant 61 : index
    %64 = memref.load %arg2[%c61] : memref<98xf32, #tpu.memory_space<smem>>
    %c62 = arith.constant 62 : index
    %65 = memref.load %arg2[%c62] : memref<98xf32, #tpu.memory_space<smem>>
    %c63 = arith.constant 63 : index
    %66 = memref.load %arg2[%c63] : memref<98xf32, #tpu.memory_space<smem>>
    %c64 = arith.constant 64 : index
    %67 = memref.load %arg2[%c64] : memref<98xf32, #tpu.memory_space<smem>>
    %c65 = arith.constant 65 : index
    %68 = memref.load %arg2[%c65] : memref<98xf32, #tpu.memory_space<smem>>
    %c66 = arith.constant 66 : index
    %69 = memref.load %arg2[%c66] : memref<98xf32, #tpu.memory_space<smem>>
    %c67 = arith.constant 67 : index
    %70 = memref.load %arg2[%c67] : memref<98xf32, #tpu.memory_space<smem>>
    %c68 = arith.constant 68 : index
    %71 = memref.load %arg2[%c68] : memref<98xf32, #tpu.memory_space<smem>>
    %c69 = arith.constant 69 : index
    %72 = memref.load %arg2[%c69] : memref<98xf32, #tpu.memory_space<smem>>
    %c70 = arith.constant 70 : index
    %73 = memref.load %arg2[%c70] : memref<98xf32, #tpu.memory_space<smem>>
    %c71 = arith.constant 71 : index
    %74 = memref.load %arg2[%c71] : memref<98xf32, #tpu.memory_space<smem>>
    %c72 = arith.constant 72 : index
    %75 = memref.load %arg2[%c72] : memref<98xf32, #tpu.memory_space<smem>>
    %c73 = arith.constant 73 : index
    %76 = memref.load %arg2[%c73] : memref<98xf32, #tpu.memory_space<smem>>
    %c74 = arith.constant 74 : index
    %77 = memref.load %arg2[%c74] : memref<98xf32, #tpu.memory_space<smem>>
    %c75 = arith.constant 75 : index
    %78 = memref.load %arg2[%c75] : memref<98xf32, #tpu.memory_space<smem>>
    %c76 = arith.constant 76 : index
    %79 = memref.load %arg2[%c76] : memref<98xf32, #tpu.memory_space<smem>>
    %c77 = arith.constant 77 : index
    %80 = memref.load %arg2[%c77] : memref<98xf32, #tpu.memory_space<smem>>
    %c78 = arith.constant 78 : index
    %81 = memref.load %arg2[%c78] : memref<98xf32, #tpu.memory_space<smem>>
    %c79 = arith.constant 79 : index
    %82 = memref.load %arg2[%c79] : memref<98xf32, #tpu.memory_space<smem>>
    %c80 = arith.constant 80 : index
    %83 = memref.load %arg2[%c80] : memref<98xf32, #tpu.memory_space<smem>>
    %c81 = arith.constant 81 : index
    %84 = memref.load %arg2[%c81] : memref<98xf32, #tpu.memory_space<smem>>
    %c82 = arith.constant 82 : index
    %85 = memref.load %arg2[%c82] : memref<98xf32, #tpu.memory_space<smem>>
    %c83 = arith.constant 83 : index
    %86 = memref.load %arg2[%c83] : memref<98xf32, #tpu.memory_space<smem>>
    %c84 = arith.constant 84 : index
    %87 = memref.load %arg2[%c84] : memref<98xf32, #tpu.memory_space<smem>>
    %c85 = arith.constant 85 : index
    %88 = memref.load %arg2[%c85] : memref<98xf32, #tpu.memory_space<smem>>
    %c86 = arith.constant 86 : index
    %89 = memref.load %arg2[%c86] : memref<98xf32, #tpu.memory_space<smem>>
    %c87 = arith.constant 87 : index
    %90 = memref.load %arg2[%c87] : memref<98xf32, #tpu.memory_space<smem>>
    %c88 = arith.constant 88 : index
    %91 = memref.load %arg2[%c88] : memref<98xf32, #tpu.memory_space<smem>>
    %c89 = arith.constant 89 : index
    %92 = memref.load %arg2[%c89] : memref<98xf32, #tpu.memory_space<smem>>
    %c90 = arith.constant 90 : index
    %93 = memref.load %arg2[%c90] : memref<98xf32, #tpu.memory_space<smem>>
    %c91 = arith.constant 91 : index
    %94 = memref.load %arg2[%c91] : memref<98xf32, #tpu.memory_space<smem>>
    %c92 = arith.constant 92 : index
    %95 = memref.load %arg2[%c92] : memref<98xf32, #tpu.memory_space<smem>>
    %c93 = arith.constant 93 : index
    %96 = memref.load %arg2[%c93] : memref<98xf32, #tpu.memory_space<smem>>
    %c94 = arith.constant 94 : index
    %97 = memref.load %arg2[%c94] : memref<98xf32, #tpu.memory_space<smem>>
    %c95 = arith.constant 95 : index
    %98 = memref.load %arg2[%c95] : memref<98xf32, #tpu.memory_space<smem>>
    %c96 = arith.constant 96 : index
    %99 = memref.load %arg2[%c96] : memref<98xf32, #tpu.memory_space<smem>>
    %c97 = arith.constant 97 : index
    %100 = memref.load %arg2[%c97] : memref<98xf32, #tpu.memory_space<smem>>
    %cst_2 = arith.constant 0.000000e+00 : f32
    %101 = vector.broadcast %cst_2 : f32 to vector<2x51xf32>
    %c0_3 = arith.constant 0 : index
    %c0_4 = arith.constant 0 : index
    %c0_5 = arith.constant 0 : index
    %102 = vector.load %arg6[%c0_3, %c0_4, %c0_5] : memref<2x2x358xf32, #tpu.memory_space<vmem>>, vector<1x2x51xf32>
    %103 = vector.shape_cast %102 : vector<1x2x51xf32> to vector<2x51xf32>
    %104 = vector.shape_cast %101 : vector<2x51xf32> to vector<1x2x51xf32>
    tpu.vector_store %arg6[%c0_3, %c0_4, %c0_5], %104 {strides = array<i32>} : memref<2x2x358xf32, #tpu.memory_space<vmem>>, vector<1x2x51xf32>,
    %cst_6 = arith.constant 0.000000e+00 : f32
    %105 = vector.broadcast %cst_6 : f32 to vector<2x51xf32>
    %c0_7 = arith.constant 0 : index
    %c0_8 = arith.constant 0 : index
    %c307 = arith.constant 307 : index
    %106 = vector.load %arg6[%c0_7, %c0_8, %c307] : memref<2x2x358xf32, #tpu.memory_space<vmem>>, vector<1x2x51xf32>
    %107 = vector.shape_cast %106 : vector<1x2x51xf32> to vector<2x51xf32>
    %108 = vector.shape_cast %105 : vector<2x51xf32> to vector<1x2x51xf32>
    tpu.vector_store %arg6[%c0_7, %c0_8, %c307], %108 {strides = array<i32>} : memref<2x2x358xf32, #tpu.memory_space<vmem>>, vector<1x2x51xf32>,
    %cst_9 = arith.constant 0.000000e+00 : f32
    %109 = vector.broadcast %cst_9 : f32 to vector<2x51xf32>
    %c1_10 = arith.constant 1 : index
    %c0_11 = arith.constant 0 : index
    %c0_12 = arith.constant 0 : index
    %110 = vector.load %arg6[%c1_10, %c0_11, %c0_12] : memref<2x2x358xf32, #tpu.memory_space<vmem>>, vector<1x2x51xf32>
    %111 = vector.shape_cast %110 : vector<1x2x51xf32> to vector<2x51xf32>
    %112 = vector.shape_cast %109 : vector<2x51xf32> to vector<1x2x51xf32>
    tpu.vector_store %arg6[%c1_10, %c0_11, %c0_12], %112 {strides = array<i32>} : memref<2x2x358xf32, #tpu.memory_space<vmem>>, vector<1x2x51xf32>,
    %cst_13 = arith.constant 0.000000e+00 : f32
    %113 = vector.broadcast %cst_13 : f32 to vector<2x51xf32>
    %c1_14 = arith.constant 1 : index
    %c0_15 = arith.constant 0 : index
    %c307_16 = arith.constant 307 : index
    %114 = vector.load %arg6[%c1_14, %c0_15, %c307_16] : memref<2x2x358xf32, #tpu.memory_space<vmem>>, vector<1x2x51xf32>
    %115 = vector.shape_cast %114 : vector<1x2x51xf32> to vector<2x51xf32>
    %116 = vector.shape_cast %113 : vector<2x51xf32> to vector<1x2x51xf32>
    tpu.vector_store %arg6[%c1_14, %c0_15, %c307_16], %116 {strides = array<i32>} : memref<2x2x358xf32, #tpu.memory_space<vmem>>, vector<1x2x51xf32>,
    %c0_17 = arith.constant 0 : index
    %c0_18 = arith.constant 0 : index
    %c0_19 = arith.constant 0 : index
    %117 = vector.load %arg1[%c0_17, %c0_18, %c0_19] : memref<2x4x256xf32, #tpu.memory_space<vmem>>, vector<1x4x256xf32>
    %118 = vector.shape_cast %117 : vector<1x4x256xf32> to vector<4x256xf32>
    %cst_20 = arith.constant dense<0.000000e+00> : vector<256xf32>
    %119 = vector.multi_reduction <add>, %118, %cst_20 [0] : vector<4x256xf32> to vector<256xf32>
    %120 = vector.shape_cast %119 : vector<256xf32> to vector<1x256xf32>
    %cst_21 = arith.constant dense<0xFF800000> : vector<256xf32>
    %121 = vector.multi_reduction <maximumf>, %118, %cst_21 [0] : vector<4x256xf32> to vector<256xf32>
    %122 = vector.shape_cast %121 : vector<256xf32> to vector<1x256xf32>
    %cst_22 = arith.constant 2.500000e-01 : f32
    %123 = vector.broadcast %cst_22 : f32 to vector<1x256xf32>
    %124 = arith.mulf %120, %123 : vector<1x256xf32>
    %c0_23 = arith.constant 0 : index
    %c0_24 = arith.constant 0 : index
    %c51_25 = arith.constant 51 : index
    %125 = vector.load %arg6[%c0_23, %c0_24, %c51_25] : memref<2x2x358xf32, #tpu.memory_space<vmem>>, vector<1x1x256xf32>
    %126 = vector.shape_cast %125 : vector<1x1x256xf32> to vector<1x256xf32>
    %127 = vector.shape_cast %124 : vector<1x256xf32> to vector<1x1x256xf32>
    tpu.vector_store %arg6[%c0_23, %c0_24, %c51_25], %127 {strides = array<i32>} : memref<2x2x358xf32, #tpu.memory_space<vmem>>, vector<1x1x256xf32>,
    %c1_26 = arith.constant 1 : index
    %c0_27 = arith.constant 0 : index
    %c51_28 = arith.constant 51 : index
    %128 = vector.load %arg6[%c1_26, %c0_27, %c51_28] : memref<2x2x358xf32, #tpu.memory_space<vmem>>, vector<1x1x256xf32>
    %129 = vector.shape_cast %128 : vector<1x1x256xf32> to vector<1x256xf32>
    %130 = vector.shape_cast %122 : vector<1x256xf32> to vector<1x1x256xf32>
    tpu.vector_store %arg6[%c1_26, %c0_27, %c51_28], %130 {strides = array<i32>} : memref<2x2x358xf32, #tpu.memory_space<vmem>>, vector<1x1x256xf32>,
    %c1_29 = arith.constant 1 : index
    %c0_30 = arith.constant 0 : index
    %c0_31 = arith.constant 0 : index
    %131 = vector.load %arg1[%c1_29, %c0_30, %c0_31] : memref<2x4x256xf32, #tpu.memory_space<vmem>>, vector<1x4x256xf32>
    %132 = vector.shape_cast %131 : vector<1x4x256xf32> to vector<4x256xf32>
    %cst_32 = arith.constant dense<0.000000e+00> : vector<256xf32>
    %133 = vector.multi_reduction <add>, %132, %cst_32 [0] : vector<4x256xf32> to vector<256xf32>
    %134 = vector.shape_cast %133 : vector<256xf32> to vector<1x256xf32>
    %cst_33 = arith.constant dense<0xFF800000> : vector<256xf32>
    %135 = vector.multi_reduction <maximumf>, %132, %cst_33 [0] : vector<4x256xf32> to vector<256xf32>
    %136 = vector.shape_cast %135 : vector<256xf32> to vector<1x256xf32>
    %cst_34 = arith.constant 2.500000e-01 : f32
    %137 = vector.broadcast %cst_34 : f32 to vector<1x256xf32>
    %138 = arith.mulf %134, %137 : vector<1x256xf32>
    %c0_35 = arith.constant 0 : index
    %c1_36 = arith.constant 1 : index
    %c51_37 = arith.constant 51 : index
    %139 = vector.load %arg6[%c0_35, %c1_36, %c51_37] : memref<2x2x358xf32, #tpu.memory_space<vmem>>, vector<1x1x256xf32>
    %140 = vector.shape_cast %139 : vector<1x1x256xf32> to vector<1x256xf32>
    %141 = vector.shape_cast %138 : vector<1x256xf32> to vector<1x1x256xf32>
    tpu.vector_store %arg6[%c0_35, %c1_36, %c51_37], %141 {strides = array<i32>} : memref<2x2x358xf32, #tpu.memory_space<vmem>>, vector<1x1x256xf32>,
    %c1_38 = arith.constant 1 : index
    %c1_39 = arith.constant 1 : index
    %c51_40 = arith.constant 51 : index
    %142 = vector.load %arg6[%c1_38, %c1_39, %c51_40] : memref<2x2x358xf32, #tpu.memory_space<vmem>>, vector<1x1x256xf32>
    %143 = vector.shape_cast %142 : vector<1x1x256xf32> to vector<1x256xf32>
    %144 = vector.shape_cast %136 : vector<1x256xf32> to vector<1x1x256xf32>
    tpu.vector_store %arg6[%c1_38, %c1_39, %c51_40], %144 {strides = array<i32>} : memref<2x2x358xf32, #tpu.memory_space<vmem>>, vector<1x1x256xf32>,
    %c0_41 = arith.constant 0 : index
    %c0_42 = arith.constant 0 : index
    %145 = vector.load %arg4[%c0_41, %c0_42] : memref<1x256xi32, #tpu.memory_space<vmem>>, vector<1x256xi32>
    %c0_43 = arith.constant 0 : index
    %c0_44 = arith.constant 0 : index
    %c0_45 = arith.constant 0 : index
    %146 = vector.load %arg6[%c0_43, %c0_44, %c0_45] : memref<2x2x358xf32, #tpu.memory_space<vmem>>, vector<1x2x256xf32>
    %147 = vector.shape_cast %146 : vector<1x2x256xf32> to vector<2x256xf32>
    %148 = vector.broadcast %3 : f32 to vector<2x256xf32>
    %149 = arith.mulf %148, %147 : vector<2x256xf32>
    %c0_46 = arith.constant 0 : index
    %c0_47 = arith.constant 0 : index
    %c16_48 = arith.constant 16 : index
    %150 = vector.load %arg6[%c0_46, %c0_47, %c16_48] : memref<2x2x358xf32, #tpu.memory_space<vmem>>, vector<1x2x256xf32>
    %151 = vector.shape_cast %150 : vector<1x2x256xf32> to vector<2x256xf32>
    %152 = vector.broadcast %10 : f32 to vector<2x256xf32>
    %153 = arith.mulf %152, %151 : vector<2x256xf32>
    %154 = arith.addf %149, %153 : vector<2x256xf32>
    %c0_49 = arith.constant 0 : index
    %c0_50 = arith.constant 0 : index
    %c32_51 = arith.constant 32 : index
    %155 = vector.load %arg6[%c0_49, %c0_50, %c32_51] : memref<2x2x358xf32, #tpu.memory_space<vmem>>, vector<1x2x256xf32>
    %156 = vector.shape_cast %155 : vector<1x2x256xf32> to vector<2x256xf32>
    %157 = vector.broadcast %17 : f32 to vector<2x256xf32>
    %158 = arith.mulf %157, %156 : vector<2x256xf32>
    %159 = arith.addf %154, %158 : vector<2x256xf32>
    %c0_52 = arith.constant 0 : index
    %c0_53 = arith.constant 0 : index
    %c48_54 = arith.constant 48 : index
    %160 = vector.load %arg6[%c0_52, %c0_53, %c48_54] : memref<2x2x358xf32, #tpu.memory_space<vmem>>, vector<1x2x256xf32>
    %161 = vector.shape_cast %160 : vector<1x2x256xf32> to vector<2x256xf32>
    %162 = vector.broadcast %24 : f32 to vector<2x256xf32>
    %163 = arith.mulf %162, %161 : vector<2x256xf32>
    %164 = arith.addf %159, %163 : vector<2x256xf32>
    %c0_55 = arith.constant 0 : index
    %c0_56 = arith.constant 0 : index
    %c64_57 = arith.constant 64 : index
    %165 = vector.load %arg6[%c0_55, %c0_56, %c64_57] : memref<2x2x358xf32, #tpu.memory_space<vmem>>, vector<1x2x256xf32>
    %166 = vector.shape_cast %165 : vector<1x2x256xf32> to vector<2x256xf32>
    %167 = vector.broadcast %31 : f32 to vector<2x256xf32>
    %168 = arith.mulf %167, %166 : vector<2x256xf32>
    %169 = arith.addf %164, %168 : vector<2x256xf32>
    %c0_58 = arith.constant 0 : index
    %c0_59 = arith.constant 0 : index
    %c80_60 = arith.constant 80 : index
    %170 = vector.load %arg6[%c0_58, %c0_59, %c80_60] : memref<2x2x358xf32, #tpu.memory_space<vmem>>, vector<1x2x256xf32>
    %171 = vector.shape_cast %170 : vector<1x2x256xf32> to vector<2x256xf32>
    %172 = vector.broadcast %38 : f32 to vector<2x256xf32>
    %173 = arith.mulf %172, %171 : vector<2x256xf32>
    %174 = arith.addf %169, %173 : vector<2x256xf32>
    %c0_61 = arith.constant 0 : index
    %c0_62 = arith.constant 0 : index
    %c96_63 = arith.constant 96 : index
    %175 = vector.load %arg6[%c0_61, %c0_62, %c96_63] : memref<2x2x358xf32, #tpu.memory_space<vmem>>, vector<1x2x256xf32>
    %176 = vector.shape_cast %175 : vector<1x2x256xf32> to vector<2x256xf32>
    %177 = vector.broadcast %45 : f32 to vector<2x256xf32>
    %178 = arith.mulf %177, %176 : vector<2x256xf32>
    %179 = arith.addf %174, %178 : vector<2x256xf32>
    %c1_64 = arith.constant 1 : index
    %c0_65 = arith.constant 0 : index
    %c0_66 = arith.constant 0 : index
    %180 = vector.load %arg6[%c1_64, %c0_65, %c0_66] : memref<2x2x358xf32, #tpu.memory_space<vmem>>, vector<1x2x256xf32>
    %181 = vector.shape_cast %180 : vector<1x2x256xf32> to vector<2x256xf32>
    %182 = vector.broadcast %52 : f32 to vector<2x256xf32>
    %183 = arith.mulf %182, %181 : vector<2x256xf32>
    %184 = arith.addf %179, %183 : vector<2x256xf32>
    %c1_67 = arith.constant 1 : index
    %c0_68 = arith.constant 0 : index
    %c16_69 = arith.constant 16 : index
    %185 = vector.load %arg6[%c1_67, %c0_68, %c16_69] : memref<2x2x358xf32, #tpu.memory_space<vmem>>, vector<1x2x256xf32>
    %186 = vector.shape_cast %185 : vector<1x2x256xf32> to vector<2x256xf32>
    %187 = vector.broadcast %59 : f32 to vector<2x256xf32>
    %188 = arith.mulf %187, %186 : vector<2x256xf32>
    %189 = arith.addf %184, %188 : vector<2x256xf32>
    %c1_70 = arith.constant 1 : index
    %c0_71 = arith.constant 0 : index
    %c32_72 = arith.constant 32 : index
    %190 = vector.load %arg6[%c1_70, %c0_71, %c32_72] : memref<2x2x358xf32, #tpu.memory_space<vmem>>, vector<1x2x256xf32>
    %191 = vector.shape_cast %190 : vector<1x2x256xf32> to vector<2x256xf32>
    %192 = vector.broadcast %66 : f32 to vector<2x256xf32>
    %193 = arith.mulf %192, %191 : vector<2x256xf32>
    %194 = arith.addf %189, %193 : vector<2x256xf32>
    %c1_73 = arith.constant 1 : index
    %c0_74 = arith.constant 0 : index
    %c48_75 = arith.constant 48 : index
    %195 = vector.load %arg6[%c1_73, %c0_74, %c48_75] : memref<2x2x358xf32, #tpu.memory_space<vmem>>, vector<1x2x256xf32>
    %196 = vector.shape_cast %195 : vector<1x2x256xf32> to vector<2x256xf32>
    %197 = vector.broadcast %73 : f32 to vector<2x256xf32>
    %198 = arith.mulf %197, %196 : vector<2x256xf32>
    %199 = arith.addf %194, %198 : vector<2x256xf32>
    %c1_76 = arith.constant 1 : index
    %c0_77 = arith.constant 0 : index
    %c64_78 = arith.constant 64 : index
    %200 = vector.load %arg6[%c1_76, %c0_77, %c64_78] : memref<2x2x358xf32, #tpu.memory_space<vmem>>, vector<1x2x256xf32>
    %201 = vector.shape_cast %200 : vector<1x2x256xf32> to vector<2x256xf32>
    %202 = vector.broadcast %80 : f32 to vector<2x256xf32>
    %203 = arith.mulf %202, %201 : vector<2x256xf32>
    %204 = arith.addf %199, %203 : vector<2x256xf32>
    %c1_79 = arith.constant 1 : index
    %c0_80 = arith.constant 0 : index
    %c80_81 = arith.constant 80 : index
    %205 = vector.load %arg6[%c1_79, %c0_80, %c80_81] : memref<2x2x358xf32, #tpu.memory_space<vmem>>, vector<1x2x256xf32>
    %206 = vector.shape_cast %205 : vector<1x2x256xf32> to vector<2x256xf32>
    %207 = vector.broadcast %87 : f32 to vector<2x256xf32>
    %208 = arith.mulf %207, %206 : vector<2x256xf32>
    %209 = arith.addf %204, %208 : vector<2x256xf32>
    %c1_82 = arith.constant 1 : index
    %c0_83 = arith.constant 0 : index
    %c96_84 = arith.constant 96 : index
    %210 = vector.load %arg6[%c1_82, %c0_83, %c96_84] : memref<2x2x358xf32, #tpu.memory_space<vmem>>, vector<1x2x256xf32>
    %211 = vector.shape_cast %210 : vector<1x2x256xf32> to vector<2x256xf32>
    %212 = vector.broadcast %94 : f32 to vector<2x256xf32>
    %213 = arith.mulf %212, %211 : vector<2x256xf32>
    %214 = arith.addf %209, %213 : vector<2x256xf32>
    %c3_i32 = arith.constant 3 : i32
    %215 = vector.broadcast %c3_i32 : i32 to vector<1x256xi32>
    %216 = arith.cmpi sge, %145, %215 : vector<1x256xi32>
    %cst_85 = arith.constant 0.000000e+00 : f32
    %217 = vector.shape_cast %216 : vector<1x256xi1> to vector<1x256xi1>
    %218 = vector.broadcast %217 : vector<1x256xi1> to vector<2x256xi1>
    %219 = vector.broadcast %cst_85 : f32 to vector<2x256xf32>
    %220 = arith.select %218, %214, %219 : vector<2x256xi1>, vector<2x256xf32>
    %c0_86 = arith.constant 0 : index
    %c0_87 = arith.constant 0 : index
    %c1_88 = arith.constant 1 : index
    %221 = vector.load %arg6[%c0_86, %c0_87, %c1_88] : memref<2x2x358xf32, #tpu.memory_space<vmem>>, vector<1x2x256xf32>
    %222 = vector.shape_cast %221 : vector<1x2x256xf32> to vector<2x256xf32>
    %223 = vector.broadcast %4 : f32 to vector<2x256xf32>
    %224 = arith.mulf %223, %222 : vector<2x256xf32>
    %c0_89 = arith.constant 0 : index
    %c0_90 = arith.constant 0 : index
    %c17_91 = arith.constant 17 : index
    %225 = vector.load %arg6[%c0_89, %c0_90, %c17_91] : memref<2x2x358xf32, #tpu.memory_space<vmem>>, vector<1x2x256xf32>
    %226 = vector.shape_cast %225 : vector<1x2x256xf32> to vector<2x256xf32>
    %227 = vector.broadcast %11 : f32 to vector<2x256xf32>
    %228 = arith.mulf %227, %226 : vector<2x256xf32>
    %229 = arith.addf %224, %228 : vector<2x256xf32>
    %c0_92 = arith.constant 0 : index
    %c0_93 = arith.constant 0 : index
    %c33_94 = arith.constant 33 : index
    %230 = vector.load %arg6[%c0_92, %c0_93, %c33_94] : memref<2x2x358xf32, #tpu.memory_space<vmem>>, vector<1x2x256xf32>
    %231 = vector.shape_cast %230 : vector<1x2x256xf32> to vector<2x256xf32>
    %232 = vector.broadcast %18 : f32 to vector<2x256xf32>
    %233 = arith.mulf %232, %231 : vector<2x256xf32>
    %234 = arith.addf %229, %233 : vector<2x256xf32>
    %c0_95 = arith.constant 0 : index
    %c0_96 = arith.constant 0 : index
    %c49_97 = arith.constant 49 : index
    %235 = vector.load %arg6[%c0_95, %c0_96, %c49_97] : memref<2x2x358xf32, #tpu.memory_space<vmem>>, vector<1x2x256xf32>
    %236 = vector.shape_cast %235 : vector<1x2x256xf32> to vector<2x256xf32>
    %237 = vector.broadcast %25 : f32 to vector<2x256xf32>
    %238 = arith.mulf %237, %236 : vector<2x256xf32>
    %239 = arith.addf %234, %238 : vector<2x256xf32>
    %c0_98 = arith.constant 0 : index
    %c0_99 = arith.constant 0 : index
    %c65_100 = arith.constant 65 : index
    %240 = vector.load %arg6[%c0_98, %c0_99, %c65_100] : memref<2x2x358xf32, #tpu.memory_space<vmem>>, vector<1x2x256xf32>
    %241 = vector.shape_cast %240 : vector<1x2x256xf32> to vector<2x256xf32>
    %242 = vector.broadcast %32 : f32 to vector<2x256xf32>
    %243 = arith.mulf %242, %241 : vector<2x256xf32>
    %244 = arith.addf %239, %243 : vector<2x256xf32>
    %c0_101 = arith.constant 0 : index
    %c0_102 = arith.constant 0 : index
    %c81_103 = arith.constant 81 : index
    %245 = vector.load %arg6[%c0_101, %c0_102, %c81_103] : memref<2x2x358xf32, #tpu.memory_space<vmem>>, vector<1x2x256xf32>
    %246 = vector.shape_cast %245 : vector<1x2x256xf32> to vector<2x256xf32>
    %247 = vector.broadcast %39 : f32 to vector<2x256xf32>
    %248 = arith.mulf %247, %246 : vector<2x256xf32>
    %249 = arith.addf %244, %248 : vector<2x256xf32>
    %c0_104 = arith.constant 0 : index
    %c0_105 = arith.constant 0 : index
    %c97_106 = arith.constant 97 : index
    %250 = vector.load %arg6[%c0_104, %c0_105, %c97_106] : memref<2x2x358xf32, #tpu.memory_space<vmem>>, vector<1x2x256xf32>
    %251 = vector.shape_cast %250 : vector<1x2x256xf32> to vector<2x256xf32>
    %252 = vector.broadcast %46 : f32 to vector<2x256xf32>
    %253 = arith.mulf %252, %251 : vector<2x256xf32>
    %254 = arith.addf %249, %253 : vector<2x256xf32>
    %c1_107 = arith.constant 1 : index
    %c0_108 = arith.constant 0 : index
    %c1_109 = arith.constant 1 : index
    %255 = vector.load %arg6[%c1_107, %c0_108, %c1_109] : memref<2x2x358xf32, #tpu.memory_space<vmem>>, vector<1x2x256xf32>
    %256 = vector.shape_cast %255 : vector<1x2x256xf32> to vector<2x256xf32>
    %257 = vector.broadcast %53 : f32 to vector<2x256xf32>
    %258 = arith.mulf %257, %256 : vector<2x256xf32>
    %259 = arith.addf %254, %258 : vector<2x256xf32>
    %c1_110 = arith.constant 1 : index
    %c0_111 = arith.constant 0 : index
    %c17_112 = arith.constant 17 : index
    %260 = vector.load %arg6[%c1_110, %c0_111, %c17_112] : memref<2x2x358xf32, #tpu.memory_space<vmem>>, vector<1x2x256xf32>
    %261 = vector.shape_cast %260 : vector<1x2x256xf32> to vector<2x256xf32>
    %262 = vector.broadcast %60 : f32 to vector<2x256xf32>
    %263 = arith.mulf %262, %261 : vector<2x256xf32>
    %264 = arith.addf %259, %263 : vector<2x256xf32>
    %c1_113 = arith.constant 1 : index
    %c0_114 = arith.constant 0 : index
    %c33_115 = arith.constant 33 : index
    %265 = vector.load %arg6[%c1_113, %c0_114, %c33_115] : memref<2x2x358xf32, #tpu.memory_space<vmem>>, vector<1x2x256xf32>
    %266 = vector.shape_cast %265 : vector<1x2x256xf32> to vector<2x256xf32>
    %267 = vector.broadcast %67 : f32 to vector<2x256xf32>
    %268 = arith.mulf %267, %266 : vector<2x256xf32>
    %269 = arith.addf %264, %268 : vector<2x256xf32>
    %c1_116 = arith.constant 1 : index
    %c0_117 = arith.constant 0 : index
    %c49_118 = arith.constant 49 : index
    %270 = vector.load %arg6[%c1_116, %c0_117, %c49_118] : memref<2x2x358xf32, #tpu.memory_space<vmem>>, vector<1x2x256xf32>
    %271 = vector.shape_cast %270 : vector<1x2x256xf32> to vector<2x256xf32>
    %272 = vector.broadcast %74 : f32 to vector<2x256xf32>
    %273 = arith.mulf %272, %271 : vector<2x256xf32>
    %274 = arith.addf %269, %273 : vector<2x256xf32>
    %c1_119 = arith.constant 1 : index
    %c0_120 = arith.constant 0 : index
    %c65_121 = arith.constant 65 : index
    %275 = vector.load %arg6[%c1_119, %c0_120, %c65_121] : memref<2x2x358xf32, #tpu.memory_space<vmem>>, vector<1x2x256xf32>
    %276 = vector.shape_cast %275 : vector<1x2x256xf32> to vector<2x256xf32>
    %277 = vector.broadcast %81 : f32 to vector<2x256xf32>
    %278 = arith.mulf %277, %276 : vector<2x256xf32>
    %279 = arith.addf %274, %278 : vector<2x256xf32>
    %c1_122 = arith.constant 1 : index
    %c0_123 = arith.constant 0 : index
    %c81_124 = arith.constant 81 : index
    %280 = vector.load %arg6[%c1_122, %c0_123, %c81_124] : memref<2x2x358xf32, #tpu.memory_space<vmem>>, vector<1x2x256xf32>
    %281 = vector.shape_cast %280 : vector<1x2x256xf32> to vector<2x256xf32>
    %282 = vector.broadcast %88 : f32 to vector<2x256xf32>
    %283 = arith.mulf %282, %281 : vector<2x256xf32>
    %284 = arith.addf %279, %283 : vector<2x256xf32>
    %c1_125 = arith.constant 1 : index
    %c0_126 = arith.constant 0 : index
    %c97_127 = arith.constant 97 : index
    %285 = vector.load %arg6[%c1_125, %c0_126, %c97_127] : memref<2x2x358xf32, #tpu.memory_space<vmem>>, vector<1x2x256xf32>
    %286 = vector.shape_cast %285 : vector<1x2x256xf32> to vector<2x256xf32>
    %287 = vector.broadcast %95 : f32 to vector<2x256xf32>
    %288 = arith.mulf %287, %286 : vector<2x256xf32>
    %289 = arith.addf %284, %288 : vector<2x256xf32>
    %c2_i32 = arith.constant 2 : i32
    %290 = vector.broadcast %c2_i32 : i32 to vector<1x256xi32>
    %291 = arith.cmpi sge, %145, %290 : vector<1x256xi32>
    %cst_128 = arith.constant 0.000000e+00 : f32
    %292 = vector.shape_cast %291 : vector<1x256xi1> to vector<1x256xi1>
    %293 = vector.broadcast %292 : vector<1x256xi1> to vector<2x256xi1>
    %294 = vector.broadcast %cst_128 : f32 to vector<2x256xf32>
    %295 = arith.select %293, %289, %294 : vector<2x256xi1>, vector<2x256xf32>
    %296 = arith.addf %220, %295 : vector<2x256xf32>
    %c0_129 = arith.constant 0 : index
    %c0_130 = arith.constant 0 : index
    %c2_131 = arith.constant 2 : index
    %297 = vector.load %arg6[%c0_129, %c0_130, %c2_131] : memref<2x2x358xf32, #tpu.memory_space<vmem>>, vector<1x2x256xf32>
    %298 = vector.shape_cast %297 : vector<1x2x256xf32> to vector<2x256xf32>
    %299 = vector.broadcast %5 : f32 to vector<2x256xf32>
    %300 = arith.mulf %299, %298 : vector<2x256xf32>
    %c0_132 = arith.constant 0 : index
    %c0_133 = arith.constant 0 : index
    %c18_134 = arith.constant 18 : index
    %301 = vector.load %arg6[%c0_132, %c0_133, %c18_134] : memref<2x2x358xf32, #tpu.memory_space<vmem>>, vector<1x2x256xf32>
    %302 = vector.shape_cast %301 : vector<1x2x256xf32> to vector<2x256xf32>
    %303 = vector.broadcast %12 : f32 to vector<2x256xf32>
    %304 = arith.mulf %303, %302 : vector<2x256xf32>
    %305 = arith.addf %300, %304 : vector<2x256xf32>
    %c0_135 = arith.constant 0 : index
    %c0_136 = arith.constant 0 : index
    %c34_137 = arith.constant 34 : index
    %306 = vector.load %arg6[%c0_135, %c0_136, %c34_137] : memref<2x2x358xf32, #tpu.memory_space<vmem>>, vector<1x2x256xf32>
    %307 = vector.shape_cast %306 : vector<1x2x256xf32> to vector<2x256xf32>
    %308 = vector.broadcast %19 : f32 to vector<2x256xf32>
    %309 = arith.mulf %308, %307 : vector<2x256xf32>
    %310 = arith.addf %305, %309 : vector<2x256xf32>
    %c0_138 = arith.constant 0 : index
    %c0_139 = arith.constant 0 : index
    %c50_140 = arith.constant 50 : index
    %311 = vector.load %arg6[%c0_138, %c0_139, %c50_140] : memref<2x2x358xf32, #tpu.memory_space<vmem>>, vector<1x2x256xf32>
    %312 = vector.shape_cast %311 : vector<1x2x256xf32> to vector<2x256xf32>
    %313 = vector.broadcast %26 : f32 to vector<2x256xf32>
    %314 = arith.mulf %313, %312 : vector<2x256xf32>
    %315 = arith.addf %310, %314 : vector<2x256xf32>
    %c0_141 = arith.constant 0 : index
    %c0_142 = arith.constant 0 : index
    %c66_143 = arith.constant 66 : index
    %316 = vector.load %arg6[%c0_141, %c0_142, %c66_143] : memref<2x2x358xf32, #tpu.memory_space<vmem>>, vector<1x2x256xf32>
    %317 = vector.shape_cast %316 : vector<1x2x256xf32> to vector<2x256xf32>
    %318 = vector.broadcast %33 : f32 to vector<2x256xf32>
    %319 = arith.mulf %318, %317 : vector<2x256xf32>
    %320 = arith.addf %315, %319 : vector<2x256xf32>
    %c0_144 = arith.constant 0 : index
    %c0_145 = arith.constant 0 : index
    %c82_146 = arith.constant 82 : index
    %321 = vector.load %arg6[%c0_144, %c0_145, %c82_146] : memref<2x2x358xf32, #tpu.memory_space<vmem>>, vector<1x2x256xf32>
    %322 = vector.shape_cast %321 : vector<1x2x256xf32> to vector<2x256xf32>
    %323 = vector.broadcast %40 : f32 to vector<2x256xf32>
    %324 = arith.mulf %323, %322 : vector<2x256xf32>
    %325 = arith.addf %320, %324 : vector<2x256xf32>
    %c0_147 = arith.constant 0 : index
    %c0_148 = arith.constant 0 : index
    %c98 = arith.constant 98 : index
    %326 = vector.load %arg6[%c0_147, %c0_148, %c98] : memref<2x2x358xf32, #tpu.memory_space<vmem>>, vector<1x2x256xf32>
    %327 = vector.shape_cast %326 : vector<1x2x256xf32> to vector<2x256xf32>
    %328 = vector.broadcast %47 : f32 to vector<2x256xf32>
    %329 = arith.mulf %328, %327 : vector<2x256xf32>
    %330 = arith.addf %325, %329 : vector<2x256xf32>
    %c1_149 = arith.constant 1 : index
    %c0_150 = arith.constant 0 : index
    %c2_151 = arith.constant 2 : index
    %331 = vector.load %arg6[%c1_149, %c0_150, %c2_151] : memref<2x2x358xf32, #tpu.memory_space<vmem>>, vector<1x2x256xf32>
    %332 = vector.shape_cast %331 : vector<1x2x256xf32> to vector<2x256xf32>
    %333 = vector.broadcast %54 : f32 to vector<2x256xf32>
    %334 = arith.mulf %333, %332 : vector<2x256xf32>
    %335 = arith.addf %330, %334 : vector<2x256xf32>
    %c1_152 = arith.constant 1 : index
    %c0_153 = arith.constant 0 : index
    %c18_154 = arith.constant 18 : index
    %336 = vector.load %arg6[%c1_152, %c0_153, %c18_154] : memref<2x2x358xf32, #tpu.memory_space<vmem>>, vector<1x2x256xf32>
    %337 = vector.shape_cast %336 : vector<1x2x256xf32> to vector<2x256xf32>
    %338 = vector.broadcast %61 : f32 to vector<2x256xf32>
    %339 = arith.mulf %338, %337 : vector<2x256xf32>
    %340 = arith.addf %335, %339 : vector<2x256xf32>
    %c1_155 = arith.constant 1 : index
    %c0_156 = arith.constant 0 : index
    %c34_157 = arith.constant 34 : index
    %341 = vector.load %arg6[%c1_155, %c0_156, %c34_157] : memref<2x2x358xf32, #tpu.memory_space<vmem>>, vector<1x2x256xf32>
    %342 = vector.shape_cast %341 : vector<1x2x256xf32> to vector<2x256xf32>
    %343 = vector.broadcast %68 : f32 to vector<2x256xf32>
    %344 = arith.mulf %343, %342 : vector<2x256xf32>
    %345 = arith.addf %340, %344 : vector<2x256xf32>
    %c1_158 = arith.constant 1 : index
    %c0_159 = arith.constant 0 : index
    %c50_160 = arith.constant 50 : index
    %346 = vector.load %arg6[%c1_158, %c0_159, %c50_160] : memref<2x2x358xf32, #tpu.memory_space<vmem>>, vector<1x2x256xf32>
    %347 = vector.shape_cast %346 : vector<1x2x256xf32> to vector<2x256xf32>
    %348 = vector.broadcast %75 : f32 to vector<2x256xf32>
    %349 = arith.mulf %348, %347 : vector<2x256xf32>
    %350 = arith.addf %345, %349 : vector<2x256xf32>
    %c1_161 = arith.constant 1 : index
    %c0_162 = arith.constant 0 : index
    %c66_163 = arith.constant 66 : index
    %351 = vector.load %arg6[%c1_161, %c0_162, %c66_163] : memref<2x2x358xf32, #tpu.memory_space<vmem>>, vector<1x2x256xf32>
    %352 = vector.shape_cast %351 : vector<1x2x256xf32> to vector<2x256xf32>
    %353 = vector.broadcast %82 : f32 to vector<2x256xf32>
    %354 = arith.mulf %353, %352 : vector<2x256xf32>
    %355 = arith.addf %350, %354 : vector<2x256xf32>
    %c1_164 = arith.constant 1 : index
    %c0_165 = arith.constant 0 : index
    %c82_166 = arith.constant 82 : index
    %356 = vector.load %arg6[%c1_164, %c0_165, %c82_166] : memref<2x2x358xf32, #tpu.memory_space<vmem>>, vector<1x2x256xf32>
    %357 = vector.shape_cast %356 : vector<1x2x256xf32> to vector<2x256xf32>
    %358 = vector.broadcast %89 : f32 to vector<2x256xf32>
    %359 = arith.mulf %358, %357 : vector<2x256xf32>
    %360 = arith.addf %355, %359 : vector<2x256xf32>
    %c1_167 = arith.constant 1 : index
    %c0_168 = arith.constant 0 : index
    %c98_169 = arith.constant 98 : index
    %361 = vector.load %arg6[%c1_167, %c0_168, %c98_169] : memref<2x2x358xf32, #tpu.memory_space<vmem>>, vector<1x2x256xf32>
    %362 = vector.shape_cast %361 : vector<1x2x256xf32> to vector<2x256xf32>
    %363 = vector.broadcast %96 : f32 to vector<2x256xf32>
    %364 = arith.mulf %363, %362 : vector<2x256xf32>
    %365 = arith.addf %360, %364 : vector<2x256xf32>
    %c1_i32 = arith.constant 1 : i32
    %366 = vector.broadcast %c1_i32 : i32 to vector<1x256xi32>
    %367 = arith.cmpi sge, %145, %366 : vector<1x256xi32>
    %cst_170 = arith.constant 0.000000e+00 : f32
    %368 = vector.shape_cast %367 : vector<1x256xi1> to vector<1x256xi1>
    %369 = vector.broadcast %368 : vector<1x256xi1> to vector<2x256xi1>
    %370 = vector.broadcast %cst_170 : f32 to vector<2x256xf32>
    %371 = arith.select %369, %365, %370 : vector<2x256xi1>, vector<2x256xf32>
    %372 = arith.addf %296, %371 : vector<2x256xf32>
    %c0_171 = arith.constant 0 : index
    %c0_172 = arith.constant 0 : index
    %c3_173 = arith.constant 3 : index
    %373 = vector.load %arg6[%c0_171, %c0_172, %c3_173] : memref<2x2x358xf32, #tpu.memory_space<vmem>>, vector<1x2x256xf32>
    %374 = vector.shape_cast %373 : vector<1x2x256xf32> to vector<2x256xf32>
    %375 = vector.broadcast %6 : f32 to vector<2x256xf32>
    %376 = arith.mulf %375, %374 : vector<2x256xf32>
    %c0_174 = arith.constant 0 : index
    %c0_175 = arith.constant 0 : index
    %c19_176 = arith.constant 19 : index
    %377 = vector.load %arg6[%c0_174, %c0_175, %c19_176] : memref<2x2x358xf32, #tpu.memory_space<vmem>>, vector<1x2x256xf32>
    %378 = vector.shape_cast %377 : vector<1x2x256xf32> to vector<2x256xf32>
    %379 = vector.broadcast %13 : f32 to vector<2x256xf32>
    %380 = arith.mulf %379, %378 : vector<2x256xf32>
    %381 = arith.addf %376, %380 : vector<2x256xf32>
    %c0_177 = arith.constant 0 : index
    %c0_178 = arith.constant 0 : index
    %c35_179 = arith.constant 35 : index
    %382 = vector.load %arg6[%c0_177, %c0_178, %c35_179] : memref<2x2x358xf32, #tpu.memory_space<vmem>>, vector<1x2x256xf32>
    %383 = vector.shape_cast %382 : vector<1x2x256xf32> to vector<2x256xf32>
    %384 = vector.broadcast %20 : f32 to vector<2x256xf32>
    %385 = arith.mulf %384, %383 : vector<2x256xf32>
    %386 = arith.addf %381, %385 : vector<2x256xf32>
    %c0_180 = arith.constant 0 : index
    %c0_181 = arith.constant 0 : index
    %c51_182 = arith.constant 51 : index
    %387 = vector.load %arg6[%c0_180, %c0_181, %c51_182] : memref<2x2x358xf32, #tpu.memory_space<vmem>>, vector<1x2x256xf32>
    %388 = vector.shape_cast %387 : vector<1x2x256xf32> to vector<2x256xf32>
    %389 = vector.broadcast %27 : f32 to vector<2x256xf32>
    %390 = arith.mulf %389, %388 : vector<2x256xf32>
    %391 = arith.addf %386, %390 : vector<2x256xf32>
    %c0_183 = arith.constant 0 : index
    %c0_184 = arith.constant 0 : index
    %c67_185 = arith.constant 67 : index
    %392 = vector.load %arg6[%c0_183, %c0_184, %c67_185] : memref<2x2x358xf32, #tpu.memory_space<vmem>>, vector<1x2x256xf32>
    %393 = vector.shape_cast %392 : vector<1x2x256xf32> to vector<2x256xf32>
    %394 = vector.broadcast %34 : f32 to vector<2x256xf32>
    %395 = arith.mulf %394, %393 : vector<2x256xf32>
    %396 = arith.addf %391, %395 : vector<2x256xf32>
    %c0_186 = arith.constant 0 : index
    %c0_187 = arith.constant 0 : index
    %c83_188 = arith.constant 83 : index
    %397 = vector.load %arg6[%c0_186, %c0_187, %c83_188] : memref<2x2x358xf32, #tpu.memory_space<vmem>>, vector<1x2x256xf32>
    %398 = vector.shape_cast %397 : vector<1x2x256xf32> to vector<2x256xf32>
    %399 = vector.broadcast %41 : f32 to vector<2x256xf32>
    %400 = arith.mulf %399, %398 : vector<2x256xf32>
    %401 = arith.addf %396, %400 : vector<2x256xf32>
    %c0_189 = arith.constant 0 : index
    %c0_190 = arith.constant 0 : index
    %c99 = arith.constant 99 : index
    %402 = vector.load %arg6[%c0_189, %c0_190, %c99] : memref<2x2x358xf32, #tpu.memory_space<vmem>>, vector<1x2x256xf32>
    %403 = vector.shape_cast %402 : vector<1x2x256xf32> to vector<2x256xf32>
    %404 = vector.broadcast %48 : f32 to vector<2x256xf32>
    %405 = arith.mulf %404, %403 : vector<2x256xf32>
    %406 = arith.addf %401, %405 : vector<2x256xf32>
    %c1_191 = arith.constant 1 : index
    %c0_192 = arith.constant 0 : index
    %c3_193 = arith.constant 3 : index
    %407 = vector.load %arg6[%c1_191, %c0_192, %c3_193] : memref<2x2x358xf32, #tpu.memory_space<vmem>>, vector<1x2x256xf32>
    %408 = vector.shape_cast %407 : vector<1x2x256xf32> to vector<2x256xf32>
    %409 = vector.broadcast %55 : f32 to vector<2x256xf32>
    %410 = arith.mulf %409, %408 : vector<2x256xf32>
    %411 = arith.addf %406, %410 : vector<2x256xf32>
    %c1_194 = arith.constant 1 : index
    %c0_195 = arith.constant 0 : index
    %c19_196 = arith.constant 19 : index
    %412 = vector.load %arg6[%c1_194, %c0_195, %c19_196] : memref<2x2x358xf32, #tpu.memory_space<vmem>>, vector<1x2x256xf32>
    %413 = vector.shape_cast %412 : vector<1x2x256xf32> to vector<2x256xf32>
    %414 = vector.broadcast %62 : f32 to vector<2x256xf32>
    %415 = arith.mulf %414, %413 : vector<2x256xf32>
    %416 = arith.addf %411, %415 : vector<2x256xf32>
    %c1_197 = arith.constant 1 : index
    %c0_198 = arith.constant 0 : index
    %c35_199 = arith.constant 35 : index
    %417 = vector.load %arg6[%c1_197, %c0_198, %c35_199] : memref<2x2x358xf32, #tpu.memory_space<vmem>>, vector<1x2x256xf32>
    %418 = vector.shape_cast %417 : vector<1x2x256xf32> to vector<2x256xf32>
    %419 = vector.broadcast %69 : f32 to vector<2x256xf32>
    %420 = arith.mulf %419, %418 : vector<2x256xf32>
    %421 = arith.addf %416, %420 : vector<2x256xf32>
    %c1_200 = arith.constant 1 : index
    %c0_201 = arith.constant 0 : index
    %c51_202 = arith.constant 51 : index
    %422 = vector.load %arg6[%c1_200, %c0_201, %c51_202] : memref<2x2x358xf32, #tpu.memory_space<vmem>>, vector<1x2x256xf32>
    %423 = vector.shape_cast %422 : vector<1x2x256xf32> to vector<2x256xf32>
    %424 = vector.broadcast %76 : f32 to vector<2x256xf32>
    %425 = arith.mulf %424, %423 : vector<2x256xf32>
    %426 = arith.addf %421, %425 : vector<2x256xf32>
    %c1_203 = arith.constant 1 : index
    %c0_204 = arith.constant 0 : index
    %c67_205 = arith.constant 67 : index
    %427 = vector.load %arg6[%c1_203, %c0_204, %c67_205] : memref<2x2x358xf32, #tpu.memory_space<vmem>>, vector<1x2x256xf32>
    %428 = vector.shape_cast %427 : vector<1x2x256xf32> to vector<2x256xf32>
    %429 = vector.broadcast %83 : f32 to vector<2x256xf32>
    %430 = arith.mulf %429, %428 : vector<2x256xf32>
    %431 = arith.addf %426, %430 : vector<2x256xf32>
    %c1_206 = arith.constant 1 : index
    %c0_207 = arith.constant 0 : index
    %c83_208 = arith.constant 83 : index
    %432 = vector.load %arg6[%c1_206, %c0_207, %c83_208] : memref<2x2x358xf32, #tpu.memory_space<vmem>>, vector<1x2x256xf32>
    %433 = vector.shape_cast %432 : vector<1x2x256xf32> to vector<2x256xf32>
    %434 = vector.broadcast %90 : f32 to vector<2x256xf32>
    %435 = arith.mulf %434, %433 : vector<2x256xf32>
    %436 = arith.addf %431, %435 : vector<2x256xf32>
    %c1_209 = arith.constant 1 : index
    %c0_210 = arith.constant 0 : index
    %c99_211 = arith.constant 99 : index
    %437 = vector.load %arg6[%c1_209, %c0_210, %c99_211] : memref<2x2x358xf32, #tpu.memory_space<vmem>>, vector<1x2x256xf32>
    %438 = vector.shape_cast %437 : vector<1x2x256xf32> to vector<2x256xf32>
    %439 = vector.broadcast %97 : f32 to vector<2x256xf32>
    %440 = arith.mulf %439, %438 : vector<2x256xf32>
    %441 = arith.addf %436, %440 : vector<2x256xf32>
    %442 = arith.addf %372, %441 : vector<2x256xf32>
    %c0_212 = arith.constant 0 : index
    %c0_213 = arith.constant 0 : index
    %c4_214 = arith.constant 4 : index
    %443 = vector.load %arg6[%c0_212, %c0_213, %c4_214] : memref<2x2x358xf32, #tpu.memory_space<vmem>>, vector<1x2x256xf32>
    %444 = vector.shape_cast %443 : vector<1x2x256xf32> to vector<2x256xf32>
    %445 = vector.broadcast %7 : f32 to vector<2x256xf32>
    %446 = arith.mulf %445, %444 : vector<2x256xf32>
    %c0_215 = arith.constant 0 : index
    %c0_216 = arith.constant 0 : index
    %c20_217 = arith.constant 20 : index
    %447 = vector.load %arg6[%c0_215, %c0_216, %c20_217] : memref<2x2x358xf32, #tpu.memory_space<vmem>>, vector<1x2x256xf32>
    %448 = vector.shape_cast %447 : vector<1x2x256xf32> to vector<2x256xf32>
    %449 = vector.broadcast %14 : f32 to vector<2x256xf32>
    %450 = arith.mulf %449, %448 : vector<2x256xf32>
    %451 = arith.addf %446, %450 : vector<2x256xf32>
    %c0_218 = arith.constant 0 : index
    %c0_219 = arith.constant 0 : index
    %c36_220 = arith.constant 36 : index
    %452 = vector.load %arg6[%c0_218, %c0_219, %c36_220] : memref<2x2x358xf32, #tpu.memory_space<vmem>>, vector<1x2x256xf32>
    %453 = vector.shape_cast %452 : vector<1x2x256xf32> to vector<2x256xf32>
    %454 = vector.broadcast %21 : f32 to vector<2x256xf32>
    %455 = arith.mulf %454, %453 : vector<2x256xf32>
    %456 = arith.addf %451, %455 : vector<2x256xf32>
    %c0_221 = arith.constant 0 : index
    %c0_222 = arith.constant 0 : index
    %c52_223 = arith.constant 52 : index
    %457 = vector.load %arg6[%c0_221, %c0_222, %c52_223] : memref<2x2x358xf32, #tpu.memory_space<vmem>>, vector<1x2x256xf32>
    %458 = vector.shape_cast %457 : vector<1x2x256xf32> to vector<2x256xf32>
    %459 = vector.broadcast %28 : f32 to vector<2x256xf32>
    %460 = arith.mulf %459, %458 : vector<2x256xf32>
    %461 = arith.addf %456, %460 : vector<2x256xf32>
    %c0_224 = arith.constant 0 : index
    %c0_225 = arith.constant 0 : index
    %c68_226 = arith.constant 68 : index
    %462 = vector.load %arg6[%c0_224, %c0_225, %c68_226] : memref<2x2x358xf32, #tpu.memory_space<vmem>>, vector<1x2x256xf32>
    %463 = vector.shape_cast %462 : vector<1x2x256xf32> to vector<2x256xf32>
    %464 = vector.broadcast %35 : f32 to vector<2x256xf32>
    %465 = arith.mulf %464, %463 : vector<2x256xf32>
    %466 = arith.addf %461, %465 : vector<2x256xf32>
    %c0_227 = arith.constant 0 : index
    %c0_228 = arith.constant 0 : index
    %c84_229 = arith.constant 84 : index
    %467 = vector.load %arg6[%c0_227, %c0_228, %c84_229] : memref<2x2x358xf32, #tpu.memory_space<vmem>>, vector<1x2x256xf32>
    %468 = vector.shape_cast %467 : vector<1x2x256xf32> to vector<2x256xf32>
    %469 = vector.broadcast %42 : f32 to vector<2x256xf32>
    %470 = arith.mulf %469, %468 : vector<2x256xf32>
    %471 = arith.addf %466, %470 : vector<2x256xf32>
    %c0_230 = arith.constant 0 : index
    %c0_231 = arith.constant 0 : index
    %c100 = arith.constant 100 : index
    %472 = vector.load %arg6[%c0_230, %c0_231, %c100] : memref<2x2x358xf32, #tpu.memory_space<vmem>>, vector<1x2x256xf32>
    %473 = vector.shape_cast %472 : vector<1x2x256xf32> to vector<2x256xf32>
    %474 = vector.broadcast %49 : f32 to vector<2x256xf32>
    %475 = arith.mulf %474, %473 : vector<2x256xf32>
    %476 = arith.addf %471, %475 : vector<2x256xf32>
    %c1_232 = arith.constant 1 : index
    %c0_233 = arith.constant 0 : index
    %c4_234 = arith.constant 4 : index
    %477 = vector.load %arg6[%c1_232, %c0_233, %c4_234] : memref<2x2x358xf32, #tpu.memory_space<vmem>>, vector<1x2x256xf32>
    %478 = vector.shape_cast %477 : vector<1x2x256xf32> to vector<2x256xf32>
    %479 = vector.broadcast %56 : f32 to vector<2x256xf32>
    %480 = arith.mulf %479, %478 : vector<2x256xf32>
    %481 = arith.addf %476, %480 : vector<2x256xf32>
    %c1_235 = arith.constant 1 : index
    %c0_236 = arith.constant 0 : index
    %c20_237 = arith.constant 20 : index
    %482 = vector.load %arg6[%c1_235, %c0_236, %c20_237] : memref<2x2x358xf32, #tpu.memory_space<vmem>>, vector<1x2x256xf32>
    %483 = vector.shape_cast %482 : vector<1x2x256xf32> to vector<2x256xf32>
    %484 = vector.broadcast %63 : f32 to vector<2x256xf32>
    %485 = arith.mulf %484, %483 : vector<2x256xf32>
    %486 = arith.addf %481, %485 : vector<2x256xf32>
    %c1_238 = arith.constant 1 : index
    %c0_239 = arith.constant 0 : index
    %c36_240 = arith.constant 36 : index
    %487 = vector.load %arg6[%c1_238, %c0_239, %c36_240] : memref<2x2x358xf32, #tpu.memory_space<vmem>>, vector<1x2x256xf32>
    %488 = vector.shape_cast %487 : vector<1x2x256xf32> to vector<2x256xf32>
    %489 = vector.broadcast %70 : f32 to vector<2x256xf32>
    %490 = arith.mulf %489, %488 : vector<2x256xf32>
    %491 = arith.addf %486, %490 : vector<2x256xf32>
    %c1_241 = arith.constant 1 : index
    %c0_242 = arith.constant 0 : index
    %c52_243 = arith.constant 52 : index
    %492 = vector.load %arg6[%c1_241, %c0_242, %c52_243] : memref<2x2x358xf32, #tpu.memory_space<vmem>>, vector<1x2x256xf32>
    %493 = vector.shape_cast %492 : vector<1x2x256xf32> to vector<2x256xf32>
    %494 = vector.broadcast %77 : f32 to vector<2x256xf32>
    %495 = arith.mulf %494, %493 : vector<2x256xf32>
    %496 = arith.addf %491, %495 : vector<2x256xf32>
    %c1_244 = arith.constant 1 : index
    %c0_245 = arith.constant 0 : index
    %c68_246 = arith.constant 68 : index
    %497 = vector.load %arg6[%c1_244, %c0_245, %c68_246] : memref<2x2x358xf32, #tpu.memory_space<vmem>>, vector<1x2x256xf32>
    %498 = vector.shape_cast %497 : vector<1x2x256xf32> to vector<2x256xf32>
    %499 = vector.broadcast %84 : f32 to vector<2x256xf32>
    %500 = arith.mulf %499, %498 : vector<2x256xf32>
    %501 = arith.addf %496, %500 : vector<2x256xf32>
    %c1_247 = arith.constant 1 : index
    %c0_248 = arith.constant 0 : index
    %c84_249 = arith.constant 84 : index
    %502 = vector.load %arg6[%c1_247, %c0_248, %c84_249] : memref<2x2x358xf32, #tpu.memory_space<vmem>>, vector<1x2x256xf32>
    %503 = vector.shape_cast %502 : vector<1x2x256xf32> to vector<2x256xf32>
    %504 = vector.broadcast %91 : f32 to vector<2x256xf32>
    %505 = arith.mulf %504, %503 : vector<2x256xf32>
    %506 = arith.addf %501, %505 : vector<2x256xf32>
    %c1_250 = arith.constant 1 : index
    %c0_251 = arith.constant 0 : index
    %c100_252 = arith.constant 100 : index
    %507 = vector.load %arg6[%c1_250, %c0_251, %c100_252] : memref<2x2x358xf32, #tpu.memory_space<vmem>>, vector<1x2x256xf32>
    %508 = vector.shape_cast %507 : vector<1x2x256xf32> to vector<2x256xf32>
    %509 = vector.broadcast %98 : f32 to vector<2x256xf32>
    %510 = arith.mulf %509, %508 : vector<2x256xf32>
    %511 = arith.addf %506, %510 : vector<2x256xf32>
    %c15_i32 = arith.constant 15 : i32
    %512 = vector.broadcast %c15_i32 : i32 to vector<1x256xi32>
    %513 = arith.cmpi slt, %145, %512 : vector<1x256xi32>
    %cst_253 = arith.constant 0.000000e+00 : f32
    %514 = vector.shape_cast %513 : vector<1x256xi1> to vector<1x256xi1>
    %515 = vector.broadcast %514 : vector<1x256xi1> to vector<2x256xi1>
    %516 = vector.broadcast %cst_253 : f32 to vector<2x256xf32>
    %517 = arith.select %515, %511, %516 : vector<2x256xi1>, vector<2x256xf32>
    %518 = arith.addf %442, %517 : vector<2x256xf32>
    %c0_254 = arith.constant 0 : index
    %c0_255 = arith.constant 0 : index
    %c5_256 = arith.constant 5 : index
    %519 = vector.load %arg6[%c0_254, %c0_255, %c5_256] : memref<2x2x358xf32, #tpu.memory_space<vmem>>, vector<1x2x256xf32>
    %520 = vector.shape_cast %519 : vector<1x2x256xf32> to vector<2x256xf32>
    %521 = vector.broadcast %8 : f32 to vector<2x256xf32>
    %522 = arith.mulf %521, %520 : vector<2x256xf32>
    %c0_257 = arith.constant 0 : index
    %c0_258 = arith.constant 0 : index
    %c21_259 = arith.constant 21 : index
    %523 = vector.load %arg6[%c0_257, %c0_258, %c21_259] : memref<2x2x358xf32, #tpu.memory_space<vmem>>, vector<1x2x256xf32>
    %524 = vector.shape_cast %523 : vector<1x2x256xf32> to vector<2x256xf32>
    %525 = vector.broadcast %15 : f32 to vector<2x256xf32>
    %526 = arith.mulf %525, %524 : vector<2x256xf32>
    %527 = arith.addf %522, %526 : vector<2x256xf32>
    %c0_260 = arith.constant 0 : index
    %c0_261 = arith.constant 0 : index
    %c37_262 = arith.constant 37 : index
    %528 = vector.load %arg6[%c0_260, %c0_261, %c37_262] : memref<2x2x358xf32, #tpu.memory_space<vmem>>, vector<1x2x256xf32>
    %529 = vector.shape_cast %528 : vector<1x2x256xf32> to vector<2x256xf32>
    %530 = vector.broadcast %22 : f32 to vector<2x256xf32>
    %531 = arith.mulf %530, %529 : vector<2x256xf32>
    %532 = arith.addf %527, %531 : vector<2x256xf32>
    %c0_263 = arith.constant 0 : index
    %c0_264 = arith.constant 0 : index
    %c53_265 = arith.constant 53 : index
    %533 = vector.load %arg6[%c0_263, %c0_264, %c53_265] : memref<2x2x358xf32, #tpu.memory_space<vmem>>, vector<1x2x256xf32>
    %534 = vector.shape_cast %533 : vector<1x2x256xf32> to vector<2x256xf32>
    %535 = vector.broadcast %29 : f32 to vector<2x256xf32>
    %536 = arith.mulf %535, %534 : vector<2x256xf32>
    %537 = arith.addf %532, %536 : vector<2x256xf32>
    %c0_266 = arith.constant 0 : index
    %c0_267 = arith.constant 0 : index
    %c69_268 = arith.constant 69 : index
    %538 = vector.load %arg6[%c0_266, %c0_267, %c69_268] : memref<2x2x358xf32, #tpu.memory_space<vmem>>, vector<1x2x256xf32>
    %539 = vector.shape_cast %538 : vector<1x2x256xf32> to vector<2x256xf32>
    %540 = vector.broadcast %36 : f32 to vector<2x256xf32>
    %541 = arith.mulf %540, %539 : vector<2x256xf32>
    %542 = arith.addf %537, %541 : vector<2x256xf32>
    %c0_269 = arith.constant 0 : index
    %c0_270 = arith.constant 0 : index
    %c85_271 = arith.constant 85 : index
    %543 = vector.load %arg6[%c0_269, %c0_270, %c85_271] : memref<2x2x358xf32, #tpu.memory_space<vmem>>, vector<1x2x256xf32>
    %544 = vector.shape_cast %543 : vector<1x2x256xf32> to vector<2x256xf32>
    %545 = vector.broadcast %43 : f32 to vector<2x256xf32>
    %546 = arith.mulf %545, %544 : vector<2x256xf32>
    %547 = arith.addf %542, %546 : vector<2x256xf32>
    %c0_272 = arith.constant 0 : index
    %c0_273 = arith.constant 0 : index
    %c101 = arith.constant 101 : index
    %548 = vector.load %arg6[%c0_272, %c0_273, %c101] : memref<2x2x358xf32, #tpu.memory_space<vmem>>, vector<1x2x256xf32>
    %549 = vector.shape_cast %548 : vector<1x2x256xf32> to vector<2x256xf32>
    %550 = vector.broadcast %50 : f32 to vector<2x256xf32>
    %551 = arith.mulf %550, %549 : vector<2x256xf32>
    %552 = arith.addf %547, %551 : vector<2x256xf32>
    %c1_274 = arith.constant 1 : index
    %c0_275 = arith.constant 0 : index
    %c5_276 = arith.constant 5 : index
    %553 = vector.load %arg6[%c1_274, %c0_275, %c5_276] : memref<2x2x358xf32, #tpu.memory_space<vmem>>, vector<1x2x256xf32>
    %554 = vector.shape_cast %553 : vector<1x2x256xf32> to vector<2x256xf32>
    %555 = vector.broadcast %57 : f32 to vector<2x256xf32>
    %556 = arith.mulf %555, %554 : vector<2x256xf32>
    %557 = arith.addf %552, %556 : vector<2x256xf32>
    %c1_277 = arith.constant 1 : index
    %c0_278 = arith.constant 0 : index
    %c21_279 = arith.constant 21 : index
    %558 = vector.load %arg6[%c1_277, %c0_278, %c21_279] : memref<2x2x358xf32, #tpu.memory_space<vmem>>, vector<1x2x256xf32>
    %559 = vector.shape_cast %558 : vector<1x2x256xf32> to vector<2x256xf32>
    %560 = vector.broadcast %64 : f32 to vector<2x256xf32>
    %561 = arith.mulf %560, %559 : vector<2x256xf32>
    %562 = arith.addf %557, %561 : vector<2x256xf32>
    %c1_280 = arith.constant 1 : index
    %c0_281 = arith.constant 0 : index
    %c37_282 = arith.constant 37 : index
    %563 = vector.load %arg6[%c1_280, %c0_281, %c37_282] : memref<2x2x358xf32, #tpu.memory_space<vmem>>, vector<1x2x256xf32>
    %564 = vector.shape_cast %563 : vector<1x2x256xf32> to vector<2x256xf32>
    %565 = vector.broadcast %71 : f32 to vector<2x256xf32>
    %566 = arith.mulf %565, %564 : vector<2x256xf32>
    %567 = arith.addf %562, %566 : vector<2x256xf32>
    %c1_283 = arith.constant 1 : index
    %c0_284 = arith.constant 0 : index
    %c53_285 = arith.constant 53 : index
    %568 = vector.load %arg6[%c1_283, %c0_284, %c53_285] : memref<2x2x358xf32, #tpu.memory_space<vmem>>, vector<1x2x256xf32>
    %569 = vector.shape_cast %568 : vector<1x2x256xf32> to vector<2x256xf32>
    %570 = vector.broadcast %78 : f32 to vector<2x256xf32>
    %571 = arith.mulf %570, %569 : vector<2x256xf32>
    %572 = arith.addf %567, %571 : vector<2x256xf32>
    %c1_286 = arith.constant 1 : index
    %c0_287 = arith.constant 0 : index
    %c69_288 = arith.constant 69 : index
    %573 = vector.load %arg6[%c1_286, %c0_287, %c69_288] : memref<2x2x358xf32, #tpu.memory_space<vmem>>, vector<1x2x256xf32>
    %574 = vector.shape_cast %573 : vector<1x2x256xf32> to vector<2x256xf32>
    %575 = vector.broadcast %85 : f32 to vector<2x256xf32>
    %576 = arith.mulf %575, %574 : vector<2x256xf32>
    %577 = arith.addf %572, %576 : vector<2x256xf32>
    %c1_289 = arith.constant 1 : index
    %c0_290 = arith.constant 0 : index
    %c85_291 = arith.constant 85 : index
    %578 = vector.load %arg6[%c1_289, %c0_290, %c85_291] : memref<2x2x358xf32, #tpu.memory_space<vmem>>, vector<1x2x256xf32>
    %579 = vector.shape_cast %578 : vector<1x2x256xf32> to vector<2x256xf32>
    %580 = vector.broadcast %92 : f32 to vector<2x256xf32>
    %581 = arith.mulf %580, %579 : vector<2x256xf32>
    %582 = arith.addf %577, %581 : vector<2x256xf32>
    %c1_292 = arith.constant 1 : index
    %c0_293 = arith.constant 0 : index
    %c101_294 = arith.constant 101 : index
    %583 = vector.load %arg6[%c1_292, %c0_293, %c101_294] : memref<2x2x358xf32, #tpu.memory_space<vmem>>, vector<1x2x256xf32>
    %584 = vector.shape_cast %583 : vector<1x2x256xf32> to vector<2x256xf32>
    %585 = vector.broadcast %99 : f32 to vector<2x256xf32>
    %586 = arith.mulf %585, %584 : vector<2x256xf32>
    %587 = arith.addf %582, %586 : vector<2x256xf32>
    %c14_i32 = arith.constant 14 : i32
    %588 = vector.broadcast %c14_i32 : i32 to vector<1x256xi32>
    %589 = arith.cmpi slt, %145, %588 : vector<1x256xi32>
    %cst_295 = arith.constant 0.000000e+00 : f32
    %590 = vector.shape_cast %589 : vector<1x256xi1> to vector<1x256xi1>
    %591 = vector.broadcast %590 : vector<1x256xi1> to vector<2x256xi1>
    %592 = vector.broadcast %cst_295 : f32 to vector<2x256xf32>
    %593 = arith.select %591, %587, %592 : vector<2x256xi1>, vector<2x256xf32>
    %594 = arith.addf %518, %593 : vector<2x256xf32>
    %c0_296 = arith.constant 0 : index
    %c0_297 = arith.constant 0 : index
    %c6_298 = arith.constant 6 : index
    %595 = vector.load %arg6[%c0_296, %c0_297, %c6_298] : memref<2x2x358xf32, #tpu.memory_space<vmem>>, vector<1x2x256xf32>
    %596 = vector.shape_cast %595 : vector<1x2x256xf32> to vector<2x256xf32>
    %597 = vector.broadcast %9 : f32 to vector<2x256xf32>
    %598 = arith.mulf %597, %596 : vector<2x256xf32>
    %c0_299 = arith.constant 0 : index
    %c0_300 = arith.constant 0 : index
    %c22_301 = arith.constant 22 : index
    %599 = vector.load %arg6[%c0_299, %c0_300, %c22_301] : memref<2x2x358xf32, #tpu.memory_space<vmem>>, vector<1x2x256xf32>
    %600 = vector.shape_cast %599 : vector<1x2x256xf32> to vector<2x256xf32>
    %601 = vector.broadcast %16 : f32 to vector<2x256xf32>
    %602 = arith.mulf %601, %600 : vector<2x256xf32>
    %603 = arith.addf %598, %602 : vector<2x256xf32>
    %c0_302 = arith.constant 0 : index
    %c0_303 = arith.constant 0 : index
    %c38_304 = arith.constant 38 : index
    %604 = vector.load %arg6[%c0_302, %c0_303, %c38_304] : memref<2x2x358xf32, #tpu.memory_space<vmem>>, vector<1x2x256xf32>
    %605 = vector.shape_cast %604 : vector<1x2x256xf32> to vector<2x256xf32>
    %606 = vector.broadcast %23 : f32 to vector<2x256xf32>
    %607 = arith.mulf %606, %605 : vector<2x256xf32>
    %608 = arith.addf %603, %607 : vector<2x256xf32>
    %c0_305 = arith.constant 0 : index
    %c0_306 = arith.constant 0 : index
    %c54_307 = arith.constant 54 : index
    %609 = vector.load %arg6[%c0_305, %c0_306, %c54_307] : memref<2x2x358xf32, #tpu.memory_space<vmem>>, vector<1x2x256xf32>
    %610 = vector.shape_cast %609 : vector<1x2x256xf32> to vector<2x256xf32>
    %611 = vector.broadcast %30 : f32 to vector<2x256xf32>
    %612 = arith.mulf %611, %610 : vector<2x256xf32>
    %613 = arith.addf %608, %612 : vector<2x256xf32>
    %c0_308 = arith.constant 0 : index
    %c0_309 = arith.constant 0 : index
    %c70_310 = arith.constant 70 : index
    %614 = vector.load %arg6[%c0_308, %c0_309, %c70_310] : memref<2x2x358xf32, #tpu.memory_space<vmem>>, vector<1x2x256xf32>
    %615 = vector.shape_cast %614 : vector<1x2x256xf32> to vector<2x256xf32>
    %616 = vector.broadcast %37 : f32 to vector<2x256xf32>
    %617 = arith.mulf %616, %615 : vector<2x256xf32>
    %618 = arith.addf %613, %617 : vector<2x256xf32>
    %c0_311 = arith.constant 0 : index
    %c0_312 = arith.constant 0 : index
    %c86_313 = arith.constant 86 : index
    %619 = vector.load %arg6[%c0_311, %c0_312, %c86_313] : memref<2x2x358xf32, #tpu.memory_space<vmem>>, vector<1x2x256xf32>
    %620 = vector.shape_cast %619 : vector<1x2x256xf32> to vector<2x256xf32>
    %621 = vector.broadcast %44 : f32 to vector<2x256xf32>
    %622 = arith.mulf %621, %620 : vector<2x256xf32>
    %623 = arith.addf %618, %622 : vector<2x256xf32>
    %c0_314 = arith.constant 0 : index
    %c0_315 = arith.constant 0 : index
    %c102 = arith.constant 102 : index
    %624 = vector.load %arg6[%c0_314, %c0_315, %c102] : memref<2x2x358xf32, #tpu.memory_space<vmem>>, vector<1x2x256xf32>
    %625 = vector.shape_cast %624 : vector<1x2x256xf32> to vector<2x256xf32>
    %626 = vector.broadcast %51 : f32 to vector<2x256xf32>
    %627 = arith.mulf %626, %625 : vector<2x256xf32>
    %628 = arith.addf %623, %627 : vector<2x256xf32>
    %c1_316 = arith.constant 1 : index
    %c0_317 = arith.constant 0 : index
    %c6_318 = arith.constant 6 : index
    %629 = vector.load %arg6[%c1_316, %c0_317, %c6_318] : memref<2x2x358xf32, #tpu.memory_space<vmem>>, vector<1x2x256xf32>
    %630 = vector.shape_cast %629 : vector<1x2x256xf32> to vector<2x256xf32>
    %631 = vector.broadcast %58 : f32 to vector<2x256xf32>
    %632 = arith.mulf %631, %630 : vector<2x256xf32>
    %633 = arith.addf %628, %632 : vector<2x256xf32>
    %c1_319 = arith.constant 1 : index
    %c0_320 = arith.constant 0 : index
    %c22_321 = arith.constant 22 : index
    %634 = vector.load %arg6[%c1_319, %c0_320, %c22_321] : memref<2x2x358xf32, #tpu.memory_space<vmem>>, vector<1x2x256xf32>
    %635 = vector.shape_cast %634 : vector<1x2x256xf32> to vector<2x256xf32>
    %636 = vector.broadcast %65 : f32 to vector<2x256xf32>
    %637 = arith.mulf %636, %635 : vector<2x256xf32>
    %638 = arith.addf %633, %637 : vector<2x256xf32>
    %c1_322 = arith.constant 1 : index
    %c0_323 = arith.constant 0 : index
    %c38_324 = arith.constant 38 : index
    %639 = vector.load %arg6[%c1_322, %c0_323, %c38_324] : memref<2x2x358xf32, #tpu.memory_space<vmem>>, vector<1x2x256xf32>
    %640 = vector.shape_cast %639 : vector<1x2x256xf32> to vector<2x256xf32>
    %641 = vector.broadcast %72 : f32 to vector<2x256xf32>
    %642 = arith.mulf %641, %640 : vector<2x256xf32>
    %643 = arith.addf %638, %642 : vector<2x256xf32>
    %c1_325 = arith.constant 1 : index
    %c0_326 = arith.constant 0 : index
    %c54_327 = arith.constant 54 : index
    %644 = vector.load %arg6[%c1_325, %c0_326, %c54_327] : memref<2x2x358xf32, #tpu.memory_space<vmem>>, vector<1x2x256xf32>
    %645 = vector.shape_cast %644 : vector<1x2x256xf32> to vector<2x256xf32>
    %646 = vector.broadcast %79 : f32 to vector<2x256xf32>
    %647 = arith.mulf %646, %645 : vector<2x256xf32>
    %648 = arith.addf %643, %647 : vector<2x256xf32>
    %c1_328 = arith.constant 1 : index
    %c0_329 = arith.constant 0 : index
    %c70_330 = arith.constant 70 : index
    %649 = vector.load %arg6[%c1_328, %c0_329, %c70_330] : memref<2x2x358xf32, #tpu.memory_space<vmem>>, vector<1x2x256xf32>
    %650 = vector.shape_cast %649 : vector<1x2x256xf32> to vector<2x256xf32>
    %651 = vector.broadcast %86 : f32 to vector<2x256xf32>
    %652 = arith.mulf %651, %650 : vector<2x256xf32>
    %653 = arith.addf %648, %652 : vector<2x256xf32>
    %c1_331 = arith.constant 1 : index
    %c0_332 = arith.constant 0 : index
    %c86_333 = arith.constant 86 : index
    %654 = vector.load %arg6[%c1_331, %c0_332, %c86_333] : memref<2x2x358xf32, #tpu.memory_space<vmem>>, vector<1x2x256xf32>
    %655 = vector.shape_cast %654 : vector<1x2x256xf32> to vector<2x256xf32>
    %656 = vector.broadcast %93 : f32 to vector<2x256xf32>
    %657 = arith.mulf %656, %655 : vector<2x256xf32>
    %658 = arith.addf %653, %657 : vector<2x256xf32>
    %c1_334 = arith.constant 1 : index
    %c0_335 = arith.constant 0 : index
    %c102_336 = arith.constant 102 : index
    %659 = vector.load %arg6[%c1_334, %c0_335, %c102_336] : memref<2x2x358xf32, #tpu.memory_space<vmem>>, vector<1x2x256xf32>
    %660 = vector.shape_cast %659 : vector<1x2x256xf32> to vector<2x256xf32>
    %661 = vector.broadcast %100 : f32 to vector<2x256xf32>
    %662 = arith.mulf %661, %660 : vector<2x256xf32>
    %663 = arith.addf %658, %662 : vector<2x256xf32>
    %c13_i32 = arith.constant 13 : i32
    %664 = vector.broadcast %c13_i32 : i32 to vector<1x256xi32>
    %665 = arith.cmpi slt, %145, %664 : vector<1x256xi32>
    %cst_337 = arith.constant 0.000000e+00 : f32
    %666 = vector.shape_cast %665 : vector<1x256xi1> to vector<1x256xi1>
    %667 = vector.broadcast %666 : vector<1x256xi1> to vector<2x256xi1>
    %668 = vector.broadcast %cst_337 : f32 to vector<2x256xf32>
    %669 = arith.select %667, %663, %668 : vector<2x256xi1>, vector<2x256xf32>
    %670 = arith.addf %594, %669 : vector<2x256xf32>
    %671 = vector.broadcast %0 : f32 to vector<2x256xf32>
    %672 = arith.addf %670, %671 : vector<2x256xf32>
    %673 = vector.broadcast %2 : f32 to vector<2x256xf32>
    %674 = arith.mulf %672, %673 : vector<2x256xf32>
    %675 = arith.negf %674 : vector<2x256xf32>
    %676 = math.exp %675 : vector<2x256xf32>
    %cst_338 = arith.constant 1.000000e+00 : f32
    %677 = vector.broadcast %cst_338 : f32 to vector<2x256xf32>
    %678 = arith.addf %677, %676 : vector<2x256xf32>
    %679 = arith.divf %677, %678 : vector<2x256xf32>
    %cst_339 = arith.constant 1.000000e+00 : f32
    %680 = vector.broadcast %cst_339 : f32 to vector<2x256xf32>
    %681 = arith.addf %680, %679 : vector<2x256xf32>
    %682 = vector.extract_strided_slice %681 {offsets = [0, 0], sizes = [1, 256], strides = [1, 1]} : vector<2x256xf32> to vector<1x256xf32>
    %c0_340 = arith.constant 0 : index
    %c0_341 = arith.constant 0 : index
    %c0_342 = arith.constant 0 : index
    %683 = vector.load %arg1[%c0_340, %c0_341, %c0_342] : memref<2x4x256xf32, #tpu.memory_space<vmem>>, vector<1x4x256xf32>
    %684 = vector.shape_cast %683 : vector<1x4x256xf32> to vector<4x256xf32>
    %685 = vector.broadcast %682 : vector<1x256xf32> to vector<4x256xf32>
    %686 = arith.mulf %684, %685 : vector<4x256xf32>
    %c0_343 = arith.constant 0 : index
    %c0_344 = arith.constant 0 : index
    %c0_345 = arith.constant 0 : index
    %687 = vector.load %arg5[%c0_343, %c0_344, %c0_345] : memref<2x4x256xf32, #tpu.memory_space<vmem>>, vector<1x4x256xf32>
    %688 = vector.shape_cast %687 : vector<1x4x256xf32> to vector<4x256xf32>
    %689 = vector.shape_cast %686 : vector<4x256xf32> to vector<1x4x256xf32>
    tpu.vector_store %arg5[%c0_343, %c0_344, %c0_345], %689 {strides = array<i32>} : memref<2x4x256xf32, #tpu.memory_space<vmem>>, vector<1x4x256xf32>,
    %690 = vector.extract_strided_slice %681 {offsets = [1, 0], sizes = [1, 256], strides = [1, 1]} : vector<2x256xf32> to vector<1x256xf32>
    %c1_346 = arith.constant 1 : index
    %c0_347 = arith.constant 0 : index
    %c0_348 = arith.constant 0 : index
    %691 = vector.load %arg1[%c1_346, %c0_347, %c0_348] : memref<2x4x256xf32, #tpu.memory_space<vmem>>, vector<1x4x256xf32>
    %692 = vector.shape_cast %691 : vector<1x4x256xf32> to vector<4x256xf32>
    %693 = vector.broadcast %690 : vector<1x256xf32> to vector<4x256xf32>
    %694 = arith.mulf %692, %693 : vector<4x256xf32>
    %c1_349 = arith.constant 1 : index
    %c0_350 = arith.constant 0 : index
    %c0_351 = arith.constant 0 : index
    %695 = vector.load %arg5[%c1_349, %c0_350, %c0_351] : memref<2x4x256xf32, #tpu.memory_space<vmem>>, vector<1x4x256xf32>
    %696 = vector.shape_cast %695 : vector<1x4x256xf32> to vector<4x256xf32>
    %697 = vector.shape_cast %694 : vector<4x256xf32> to vector<1x4x256xf32>
    tpu.vector_store %arg5[%c1_349, %c0_350, %c0_351], %697 {strides = array<i32>} : memref<2x4x256xf32, #tpu.memory_space<vmem>>, vector<1x4x256xf32>,
    return
  }
  func.func @transform_0(%arg0: i32) -> (i32, i32, i32) {
    %c0_i32 = arith.constant 0 : i32
    %c0_i32_0 = arith.constant 0 : i32
    %c0_i32_1 = arith.constant 0 : i32
    return %arg0, %c0_i32, %c0_i32_0 : i32, i32, i32
  }
  func.func @transform_1(%arg0: i32) -> i32 {
    %c0_i32 = arith.constant 0 : i32
    %c0_i32_0 = arith.constant 0 : i32
    return %c0_i32 : i32
  }
  func.func @transform_2(%arg0: i32) -> i32 {
    %c0_i32 = arith.constant 0 : i32
    %c0_i32_0 = arith.constant 0 : i32
    return %c0_i32 : i32
  }
  func.func @transform_3(%arg0: i32) -> (i32, i32) {
    %c0_i32 = arith.constant 0 : i32
    %c0_i32_0 = arith.constant 0 : i32
    %c0_i32_1 = arith.constant 0 : i32
    return %c0_i32, %c0_i32_0 : i32, i32
  }
  func.func @transform_4(%arg0: i32) -> (i32, i32, i32) {
    %c0_i32 = arith.constant 0 : i32
    %c0_i32_0 = arith.constant 0 : i32
    %c0_i32_1 = arith.constant 0 : i32
    return %arg0, %c0_i32, %c0_i32_0 : i32, i32, i32
  }
}

</mosaic_0001>

<bundles_post_ra>
// kernel: spatial_attention.1
= control target key start
LH: loop header
LB: loop body
LE: loop exit
PB: predicated region body
PF: predicated region fallthrough
CT: control target
= control target key end

     0   :  { %9 = vsyncpa [#allocation4], 0  ;;  %s2386_s0 = inlined_call_operand.vmem [shape: f32[2,4,256], index: 0, kind: input, shape index: {}]   ;;  %s2387_s1 = inlined_call_operand.vmem [shape: f32[98], index: 1, kind: input, shape index: {}]   ;;  %s2388_s2 = inlined_call_operand.vmem [shape: f32[2], index: 2, kind: input, shape index: {}]   ;;  %s2389_s3 = inlined_call_operand.vmem [shape: s32[1,256], index: 3, kind: input, shape index: {}]   ;;  %s2390_s4 = inlined_call_operand.vmem [shape: f32[2,4,256], index: 4, kind: output, shape index: {}]  }
   0x1   :  { %s19_s17 = sshll.u32 %s2387_s1, 4  ;;  %s20_s17 = int_to_ptr.vmem [resolvable:$true] %s19_s17 }
   0x2   :  { %10 = vsyncpa [#allocation6], 0  ;;  %s29_s20 = sshll.u32 %s2388_s2, 4  ;;  %s1592_s21 = scalar_lea.vmem %s20_s17, 16  ;;  %s30_s20 = int_to_ptr.vmem [resolvable:$true] %s29_s20 }
   0x3   :  { %p1593_p0 = scmp.ne.s32.totalorder %s20_s17, %s1592_s21  ;;  %p1597_p1 = scmp.lt.s32.totalorder %s20_s17, %s20_s17 }
   0x4   :  { %p1598_p2 = scmp.lt.s32.totalorder %s1592_s21, %s1592_s21 }
   0x6   :  { %p1599_p3 = por %p1598_p2, %p1597_p1 }
   0x8   :  { %p1600_p4 = pnand %p1599_p3, %p1593_p0 }
   0xa   :  { %1603 = shalt.err (!%p1600_p4)
}
   0xb   :  { %s1620_s22 = smov [#allocation3]   ;;  %s1604_s23 = scalar_lea.vmem %s30_s20, 16 }
   0xc   :  { %22 = dma.vmem_to_smem %s20_s17, 16, %s1620_s22, [#allocation4]  }
   0xd   :  { %p1605_p5 = scmp.ne.s32.totalorder %s30_s20, %s1604_s23  ;;  %p1609_p6 = scmp.lt.s32.totalorder %s30_s20, %s30_s20 }
   0xe   :  { %p1610_p7 = scmp.lt.s32.totalorder %s1604_s23, %s1604_s23 }
  0x10   :  { %p1611_p8 = por %p1610_p7, %p1609_p6 }
  0x12   :  { %p1612_p9 = pnand %p1611_p8, %p1605_p5 }
  0x14   :  { %1615 = shalt.err (!%p1612_p9)
}
  0x15   :  { %s1621_s1 = smov [#allocation5]  }
  0x16   :  { %32 = dma.vmem_to_smem %s30_s20, 16, %s1621_s1, [#allocation6]  }
  0x17   :  { %1616 = dma.done.wait [#allocation4], 16  }
  0x18   :  { %1617 = vsyncadd [#allocation4], 4294967280 }
  0x19   :  { %1618 = dma.done.wait [#allocation6], 16  }
  0x1a   :  { %1619 = vsyncadd [#allocation6], 4294967280 }
  0x1b   :  { %41 = sfence }
  0x1c   :  { %v152_v0 = vld [vmem:[%s2386_s0] sm:$0xff]  ;;  %vm156_vm0 = vcmask 1043456   ;;  %v1554_v1 = vld [vmem:[%s2386_s0 + $0x8] sm:$0xff]  ;;  %v193_v4 = vlaneseq  ;;  %v1622_v6 = vmov 1966171168   ;;  %vm145_vm1 = vcmask 410624  }
  0x1d   :  { %v154_v2 = vcombine.high %v152_v0, %v152_v0  ;;  %v171_v3 = vsel %vm156_vm0, %v152_v0, -inf  ;;  %v191_v7 = vunpack.c.l.s4 %v1622_v6  ;;  %v241_v8 = vcombine.high %v1554_v1, %v1554_v1  ;;  %s1624_s27 = smov 51   ;;  %s1520_s28 = sld [smem:[#allocation3 + $0x40]] }
  0x1e   :  { %v172_v5 = vrot.slane %v171_v3, 4  ;;  %v257_v10 = vsel %vm156_vm0, %v1554_v1, -inf  ;;  %v157_v11 = vsel %vm156_vm0, %v152_v0, 0.0  ;;  %v1681_v15 = vshrl.u32 %v193_v4, 7  ;;  %s1513_s29 = sld [smem:[#allocation3 + $0x39]]  ;;  %s1514_s5 = sld [smem:[#allocation3 + $0x3a]] }
  0x1f   :  { %v178_v9 = vsel %vm156_vm0, %v154_v2, -inf  ;;  %v258_v14 = vrot.slane %v257_v10, 4  ;;  %v264_v16 = vsel %vm156_vm0, %v241_v8, -inf  ;;  %v158_v17 = vrot.slane %v157_v11, 4  ;;  %s1521_s30 = sld [smem:[#allocation3 + $0x41]]  ;;  %s1534_s6 = sld [smem:[#allocation3 + $0x4e]] }
  0x20   :  { %v173_v12 = vmax.f32 %v171_v3, %v172_v5  ;;  %v179_v13 = vrot.slane %v178_v9, 4  ;;  %2398 = vst [vmem:[#allocation9_spill] sm:$0xff] %v1681_v15  ;;  %v164_v18 = vsel %vm156_vm0, %v154_v2, 0.0  ;;  %v192_v21 = vunpack.c.0.s8 %v191_v7  ;;  %s1527_s7 = sld [smem:[#allocation3 + $0x47]]  ;;  %s1516_s8 = sld [smem:[#allocation3 + $0x3c]] }
  0x21   :  { %v259_v22 = vmax.f32 %v257_v10, %v258_v14  ;;  %v265_v23 = vrot.slane %v264_v16, 4  ;;  %v159_v24 = vadd.f32 %v158_v17, %v157_v11  ;;  %v165_v25 = vrot.slane %v164_v18, 4  ;;  %s1515_s9 = sld [smem:[#allocation3 + $0x3b]]  ;;  %s1625_s10 = smov 96  }
  0x22   :  { %v174_v19 = vrot.slane %v173_v12, 2  ;;  %v180_v20 = vmax.f32 %v178_v9, %v179_v13  ;;  %v243_v26 = vsel %vm156_vm0, %v1554_v1, 0.0  ;;  %v250_v34 = vsel %vm156_vm0, %v241_v8, 0.0  ;;  %s1626_s11 = smov 112   ;;  %s1522_s12 = sld [smem:[#allocation3 + $0x42]] }
  0x23   :  { %v260_v29 = vrot.slane %v259_v22, 2  ;;  %v244_v30 = vrot.slane %v243_v26, 4  ;;  %v266_v31 = vmax.f32 %v264_v16, %v265_v23  ;;  %v160_v32 = vrot.slane %v159_v24, 2  ;;  %s1528_s13 = sld [smem:[#allocation3 + $0x48]]  ;;  %s1535_s14 = sld [smem:[#allocation3 + $0x4f]] }
  0x24   :  { %v175_v27 = vmax.f32 %v173_v12, %v174_v19  ;;  %v181_v28 = vrot.slane %v180_v20, 2  ;;  %v166_v33 = vadd.f32 %v165_v25, %v164_v18  ;;  %v251_v42 = vrot.slane %v250_v34, 4  ;;  %s1541_s15 = sld [smem:[#allocation3 + $0x55]]  ;;  %s1627_s16 = smov 64  }
  0x25   :  { %v261_v37 = vmax.f32 %v259_v22, %v260_v29  ;;  %v245_v38 = vadd.f32 %v244_v30, %v243_v26  ;;  %v267_v39 = vrot.slane %v266_v31, 2  ;;  %v161_v40 = vadd.f32 %v160_v32, %v159_v24  ;;  %s1628_s17 = smov 80   ;;  %s1517_s18 = sld [smem:[#allocation3 + $0x3d]] }
  0x26   :  { %v176_v35 = vrot.slane %v175_v27, 1  ;;  %v182_v36 = vmax.f32 %v180_v20, %v181_v28  ;;  %v167_v41 = vrot.slane %v166_v33, 2  ;;  %v252_v50 = vadd.f32 %v251_v42, %v250_v34  ;;  %s1523_s19 = sld [smem:[#allocation3 + $0x43]]  ;;  %s1548_s20 = sld [smem:[#allocation3 + $0x5c]] }
  0x27   :  { %v262_v45 = vrot.slane %v261_v37, 1  ;;  %v246_v46 = vrot.slane %v245_v38, 2  ;;  %v268_v47 = vmax.f32 %v266_v31, %v267_v39  ;;  %v162_v48 = vrot.slane %v161_v40, 1  ;;  %s1529_s21 = sld [smem:[#allocation3 + $0x49]]  ;;  %s1530_s22 = sld [smem:[#allocation3 + $0x4a]] }
  0x28   :  { %v177_v43 = vmax.f32 %v175_v27, %v176_v35  ;;  %v183_v44 = vrot.slane %v182_v36, 1  ;;  %v168_v49 = vadd.f32 %v167_v41, %v166_v33  ;;  %v195_v52 = vsub.s32 %v192_v21, %v1681_v15  ;;  %s1542_s23 = sld [smem:[#allocation3 + $0x56]]  ;;  %s1629_s1 = smov 48  }
  0x29   :  { %v263_v53 = vmax.f32 %v261_v37, %v262_v45  ;;  %v247_v54 = vadd.f32 %v246_v46, %v245_v38  ;;  %v269_v55 = vrot.slane %v268_v47, 1  ;;  %v163_v56 = vadd.f32 %v162_v48, %v161_v40  ;;  %s1518_s2 = sld [smem:[#allocation3 + $0x3e]]  ;;  %s1524_s24 = sld [smem:[#allocation3 + $0x44]] }
  0x2a   :  { %v184_v51 = vmax.f32 %v182_v36, %v183_v44  ;;  %v169_v57 = vrot.slane %v168_v49, 1  ;;  %v253_v58 = vrot.slane %v252_v50, 2  ;;  %vm147_vm2 = vcmask 828824   ;;  %s1549_s25 = sld [smem:[#allocation3 + $0x5d]]  ;;  %s1536_s26 = sld [smem:[#allocation3 + $0x50]] }
  0x2b   :  { %v248_v60 = vrot.slane %v247_v54, 1  ;;  %v270_v61 = vmax.f32 %v268_v47, %v269_v55  ;;  %v185_v63 = vmul.f32 0.25, %v163_v56  ;;  %v1623_v7 = vmov 0.0  }
  0x2c   :  { %v217_v59 = vcombine.low %v177_v43, %v184_v51  ;;  %v170_v62 = vadd.f32 %v169_v57, %v168_v49  ;;  %v254_v0 = vadd.f32 %v253_v58, %v252_v50  ;;  %150 = vst.msk [vmem:[#allocation2 + $0x6] sm:$0x3] %vm145_vm1, %v1623_v7  ;;  %146 = vst.msk [vmem:[#allocation2] sm:$0x3] %vm145_vm1, %v1623_v7  ;;  %vm211_vm3 = vcmp.ge.s32.totalorder %v193_v4, 51 }
  0x2d   :  { %v249_v2 = vadd.f32 %v248_v60, %v247_v54  ;;  %v299_v3 = vcombine.low %v263_v53, %v270_v61  ;;  %151 = vst.msk [vmem:[#allocation2 + $0xa] sm:$0x3] %vm147_vm2, %v1623_v7  ;;  %148 = vst.msk [vmem:[#allocation2 + $0x4] sm:$0x3] %vm147_vm2, %v1623_v7  ;;  %vm212_vm4 = vcmp.lt.s32.totalorder %v193_v4, 307  ;;  %vm207_vm5 = vcmask 416768  }
  0x2e   :  { %v224_v1 = vrot.slane %v217_v59, %v195_v52  ;;  %v186_v5 = vmul.f32 0.25, %v170_v62  ;;  %v255_v6 = vrot.slane %v254_v0, 1  ;;  %vm1690_vm6 = vmand %vm211_vm3, %vm212_vm4  ;;  %v538_v33 = vstv %s1520_s28  ;;  %s1531_s28 = sld [smem:[#allocation3 + $0x4b]] }
  0x2f   :  { %v306_v9 = vrot.slane %v299_v3, %v195_v52  ;;  %v271_v12 = vmul.f32 0.25, %v249_v2  ;;  %v529_v34 = vstv %s1513_s29  ;;  %v695_v38 = vstv %s1521_s30  ;;  %s1537_s29 = sld [smem:[#allocation3 + $0x51]]  ;;  %s1543_s30 = sld [smem:[#allocation3 + $0x57]] }
  0x30   :  { %v231_v8 = vrot.slane %v224_v1, %v195_v52  ;;  %v189_v10 = vcombine.low %v185_v63, %v186_v5  ;;  %v256_v11 = vadd.f32 %v255_v6, %v254_v0  ;;  %v686_v39 = vstv %s1514_s5  ;;  %s1525_s5 = sld [smem:[#allocation3 + $0x45]] }
  0x31   :  { %v313_v13 = vrot.slane %v306_v9, %v195_v52  ;;  %v556_v42 = vstv %s1534_s6  ;;  %v547_v43 = vstv %s1527_s7  ;;  %v986_v46 = vstv %s1516_s8  ;;  %s1538_s6 = sld [smem:[#allocation3 + $0x52]]  ;;  %s1544_s7 = sld [smem:[#allocation3 + $0x58]] }
  0x32   :  { %232 = vrot.lane.b32.xlu1 %v231_v8, %s1624_s27  ;;  %v196_v14 = vrot.slane %v189_v10, %v195_v52  ;;  %v272_v16 = vmul.f32 0.25, %v256_v11  ;;  %v843_v47 = vstv %s1515_s9  ;;  %v852_v50 = vstv %s1522_s12  ;;  %s1532_s8 = sld [smem:[#allocation3 + $0x4c]]  ;;  %s1470_s9 = sld [smem:[#allocation3 + $0xe]] }
  0x33   :  { %v704_v51 = vstv %s1528_s13  ;;  %v713_v54 = vstv %s1535_s14  ;;  %v565_v55 = vstv %s1541_s15  ;;  %v1143_v58 = vstv %s1517_s18  ;;  %s1471_s12 = sld [smem:[#allocation3 + $0xf]]  ;;  %s1478_s14 = sld [smem:[#allocation3 + $0x16]] }
  0x34   :  { %v203_v17 = vrot.slane %v196_v14, %v195_v52  ;;  %v275_v18 = vcombine.low %v271_v12, %v272_v16  ;;  %v995_v59 = vstv %s1523_s19  ;;  %v574_v62 = vstv %s1548_s20  ;;  %s1463_s13 = sld [smem:[#allocation3 + $0x7]]  ;;  %s1464_s15 = sld [smem:[#allocation3 + $0x8]] }
  0x35   :  { %v861_v63 = vstv %s1529_s21  ;;  %v1004_v2 = vstv %s1530_s22  ;;  %v722_v3 = vstv %s1542_s23  ;;  %v1300_v7 = vstv %s1518_s2  ;;  %s1466_s18 = sld [smem:[#allocation3 + $0xa]]  ;;  %s1465_s19 = sld [smem:[#allocation3 + $0x9]] }
  0x36   :  { %314 = vrot.lane.b32.xlu1 %v313_v13, %s1624_s27  ;;  %204 = vrot.lane.b32.xlu0 %v203_v17, %s1624_s27  ;;  %v282_v19 = vrot.slane %v275_v18, %v195_v52  ;;  %v1152_v8 = vstv %s1524_s24  ;;  %v731_v11 = vstv %s1549_s25  ;;  %s1479_s20 = sld [smem:[#allocation3 + $0x17]]  ;;  %s1472_s21 = sld [smem:[#allocation3 + $0x10]]  ;;  %vm332_vm7 = vcmask 916480  }
  0x37   :  { %v870_v12 = vstv %s1536_s26  ;;  %v1161_v16 = vstv %s1531_s28  ;;  %v1013_v17 = vstv %s1537_s29  ;;  %s1473_s22 = sld [smem:[#allocation3 + $0x11]]  ;;  %s1485_s23 = sld [smem:[#allocation3 + $0x1d]]  ;;  %vm342_vm8 = vcmask 785408  }
  0x38   :  { %v289_v20 = vrot.slane %v282_v19, %v195_v52  ;;  %s1486_s2 = sld [smem:[#allocation3 + $0x1e]]  ;;  %s1467_s24 = sld [smem:[#allocation3 + $0xb]]  ;;  %vm362_vm9 = vcmask 523264   ;;  %vm352_vm10 = vcmask 654336   ;;  %vm372_vm11 = vcmask 392192  }
  0x39   :  { %s1468_s25 = sld [smem:[#allocation3 + $0xc]]  ;;  %s1499_s28 = sld [smem:[#allocation3 + $0x2b]]  ;;  %vm382_vm12 = vcmask 261120   ;;  %vm618_vm0 = vcmask 1039360  }
  0x3a   :  { %290 = vrot.lane.b32.xlu0 %v289_v20, %s1624_s27  ;;  %s1630_s27 = smov 32   ;;  %v879_v20 = vstv %s1543_s30  ;;  %s1492_s26 = sld [smem:[#allocation3 + $0x24]] }
  0x3b   :  { %s1474_s29 = sld [smem:[#allocation3 + $0x12]]  ;;  %s1481_s30 = sld [smem:[#allocation3 + $0x19]] }
  0xa4   :  { %v233_v21 = vpop.permute.xlu1 %232 }
  0xa5   :  { %v234_v23 = vrot.slane %v233_v21, 7 }
  0xa7   :  { %v235_v24 = vsel %vm207_vm5, %v234_v23, %v233_v21  ;;  %v1309_v21 = vstv %s1525_s5  ;;  %s1480_s5 = sld [smem:[#allocation3 + $0x18]] }
  0xa8   :  { %237 = vst.msk [vmem:[#allocation2 + $0x6] ss:$2 sm:$0x7] %vm1690_vm6, %v235_v24  ;;  %v315_v25 = vpop.permute.xlu1 %314  ;;  %v205_v27 = vpop.permute.xlu0 %204  ;;  %v1170_v24 = vstv %s1538_s6  ;;  %s1469_s6 = sld [smem:[#allocation3 + $0xd]] }
  0xa9   :  { %v316_v26 = vrot.slane %v315_v25, 7  ;;  %v206_v28 = vrot.slane %v205_v27, 7 }
  0xab   :  { %v317_v4 = vsel %vm207_vm5, %v316_v26, %v315_v25  ;;  %v208_v29 = vsel %vm207_vm5, %v206_v28, %v205_v27  ;;  %v1022_v25 = vstv %s1544_s7  ;;  %s1493_s7 = sld [smem:[#allocation3 + $0x25]] }
  0xac   :  { %320 = vst.msk [vmem:[#allocation2 + $0x7] ss:$2 sm:$0x7] %vm1690_vm6, %v317_v4  ;;  %214 = vst.msk [vmem:[#allocation2] ss:$2 sm:$0x7] %vm1690_vm6, %v208_v29  ;;  %v291_v30 = vpop.permute.xlu0 %290  ;;  %v1318_v4 = vstv %s1532_s8  ;;  %v336_v29 = vstv %s1470_s9 }
  0xad   :  { %v292_v31 = vrot.slane %v291_v30, 7  ;;  %s1500_s8 = sld [smem:[#allocation3 + $0x2c]]  ;;  %s1475_s9 = sld [smem:[#allocation3 + $0x13]] }
  0xaf   :  { %v293_v32 = vsel %vm207_vm5, %v292_v31, %v291_v30 }
  0xb0   :  { %296 = vst.msk [vmem:[#allocation2 + $0x1] ss:$2 sm:$0x7] %vm1690_vm6, %v293_v32  ;;  %v481_v32 = vstv %s1471_s12  ;;  %s1482_s12 = sld [smem:[#allocation3 + $0x1a]]  ;;  %vm775_vm6 = vcmask 1031168  }
  0xb3   :  { %v1706_v35 = vld [vmem:[#allocation2 + $0x6] sm:$0x3f] }
  0xb4   :  { %v539_v36 = vmul.f32 %v538_v33, %v1706_v35  ;;  %v530_v37 = vmul.f32 %v529_v34, %v1706_v35  ;;  %v696_v40 = vmul.f32 %v695_v38, %v1706_v35  ;;  %v687_v41 = vmul.f32 %v686_v39, %v1706_v35 }
  0xb5   :  { %v557_v44 = vmul.f32 %v556_v42, %v1706_v35  ;;  %v548_v45 = vmul.f32 %v547_v43, %v1706_v35  ;;  %v987_v48 = vmul.f32 %v986_v46, %v1706_v35  ;;  %v844_v49 = vmul.f32 %v843_v47, %v1706_v35 }
  0xb6   :  { %541 = vrot.lane.b32.xlu1 %v539_v36, %s1625_s10  ;;  %532 = vrot.lane.b32.xlu0 %v530_v37, %s1626_s11  ;;  %v853_v52 = vmul.f32 %v852_v50, %v1706_v35  ;;  %v705_v53 = vmul.f32 %v704_v51, %v1706_v35  ;;  %v714_v56 = vmul.f32 %v713_v54, %v1706_v35  ;;  %v326_v33 = vstv %s1463_s13  ;;  %s1487_s13 = sld [smem:[#allocation3 + $0x1f]] }
  0xb7   :  { %v566_v57 = vmul.f32 %v565_v55, %v1706_v35  ;;  %v1144_v60 = vmul.f32 %v1143_v58, %v1706_v35  ;;  %v996_v61 = vmul.f32 %v995_v59, %v1706_v35  ;;  %v575_v0 = vmul.f32 %v574_v62, %v1706_v35  ;;  %v1762_v28 = vld [vmem:[#allocation2] sm:$0x3f] }
  0xb8   :  { %v862_v1 = vmul.f32 %v861_v63, %v1706_v35  ;;  %v1005_v5 = vmul.f32 %v1004_v2, %v1706_v35  ;;  %v723_v6 = vmul.f32 %v722_v3, %v1706_v35  ;;  %v1301_v9 = vmul.f32 %v1300_v7, %v1706_v35 }
  0xb9   :  { %v1153_v10 = vmul.f32 %v1152_v8, %v1706_v35  ;;  %v732_v13 = vmul.f32 %v731_v11, %v1706_v35  ;;  %v871_v14 = vmul.f32 %v870_v12, %v1706_v35  ;;  %v1162_v18 = vmul.f32 %v1161_v16, %v1706_v35 }
  0xba   :  { %698 = vrot.lane.b32.xlu1 %v696_v40, %s1625_s10  ;;  %689 = vrot.lane.b32.xlu0 %v687_v41, %s1626_s11  ;;  %v1014_v19 = vmul.f32 %v1013_v17, %v1706_v35  ;;  %v880_v22 = vmul.f32 %v879_v20, %v1706_v35  ;;  %v1310_v23 = vmul.f32 %v1309_v21, %v1706_v35  ;;  %v490_v37 = vstv %s1478_s14  ;;  %s1494_s14 = sld [smem:[#allocation3 + $0x26]] }
  0xbb   :  { %v1171_v26 = vmul.f32 %v1170_v24, %v1706_v35  ;;  %v1023_v27 = vmul.f32 %v1022_v25, %v1706_v35  ;;  %v1319_v30 = vmul.f32 %v1318_v4, %v1706_v35  ;;  %v337_v31 = vmul.f32 %v336_v29, %v1762_v28 }
  0xbc   :  { %v482_v34 = vmul.f32 %v481_v32, %v1762_v28  ;;  %v327_v36 = vmul.f32 %v326_v33, %v1762_v28  ;;  %v472_v38 = vstv %s1464_s15  ;;  %v491_v39 = vmul.f32 %v490_v37, %v1762_v28  ;;  %s1488_s15 = sld [smem:[#allocation3 + $0x20]] }
  0xbd   :  { %v473_v40 = vmul.f32 %v472_v38, %v1762_v28  ;;  %v786_v41 = vstv %s1466_s18  ;;  %v629_v42 = vstv %s1465_s19  ;;  %v638_v46 = vstv %s1472_s21  ;;  %s1495_s18 = sld [smem:[#allocation3 + $0x27]]  ;;  %s1476_s19 = sld [smem:[#allocation3 + $0x14]] }
  0xbe   :  { %559 = vrot.lane.b32.xlu1 %v557_v44, %s1627_s16  ;;  %550 = vrot.lane.b32.xlu0 %v548_v45, %s1628_s17  ;;  %v787_v43 = vmul.f32 %v786_v41, %v1762_v28  ;;  %v630_v44 = vmul.f32 %v629_v42, %v1762_v28  ;;  %v647_v45 = vstv %s1479_s20  ;;  %v499_v50 = vstv %s1485_s23  ;;  %s1483_s20 = sld [smem:[#allocation3 + $0x1b]]  ;;  %s1489_s21 = sld [smem:[#allocation3 + $0x21]] }
  0xbf   :  { %v648_v47 = vmul.f32 %v647_v45, %v1762_v28  ;;  %v929_v54 = vstv %s1467_s24  ;;  %v508_v58 = vstv %s1492_s26  ;;  %v938_v62 = vstv %s1474_s29  ;;  %s1501_s23 = sld [smem:[#allocation3 + $0x2d]]  ;;  %s1496_s24 = sld [smem:[#allocation3 + $0x28]] }
  0xc0   :  { %v804_v2 = vstv %s1480_s5  ;;  %v665_v7 = vstv %s1493_s7  ;;  %v1095_v11 = vstv %s1475_s9  ;;  %v813_v16 = vstv %s1487_s13  ;;  %s1503_s26 = sld [smem:[#allocation3 + $0x2f]]  ;;  %s1504_s29 = sld [smem:[#allocation3 + $0x30]] }
  0xc1   :  { %s1551_s5 = sld [smem:[#allocation3 + $0x5f]]  ;;  %s1539_s7 = sld [smem:[#allocation3 + $0x53]] }
  0xc2   :  { %989 = vrot.lane.b32.xlu1 %v987_v48, %s1626_s11  ;;  %846 = vrot.lane.b32.xlu0 %v844_v49, %s1626_s11  ;;  %v639_v48 = vmul.f32 %v638_v46, %v1762_v28  ;;  %v795_v49 = vstv %s1473_s22  ;;  %v956_v20 = vstv %s1488_s15  ;;  %s1502_s22 = sld [smem:[#allocation3 + $0x2e]]  ;;  %s1546_s9 = sld [smem:[#allocation3 + $0x5a]] }
  0xc3   :  { %v796_v51 = vmul.f32 %v795_v49, %v1762_v28  ;;  %v1252_v24 = vstv %s1476_s19  ;;  %s1477_s13 = sld [smem:[#allocation3 + $0x15]]  ;;  %s1491_s15 = sld [smem:[#allocation3 + $0x23]] }
  0xc4   :  { %v1113_v4 = vstv %s1489_s21  ;;  %s1512_s19 = sld [smem:[#allocation3 + $0x38]]  ;;  %s1526_s21 = sld [smem:[#allocation3 + $0x46]] }
  0xc5   :  { %v1114_v32 = vmul.f32 %v1113_v4, %v1762_v28  ;;  %v1122_v41 = vstv %s1496_s24  ;;  %s1962_s24 = sld [smem:[#allocation3 + $0x36]] }
  0xc6   :  { %855 = vrot.lane.b32.xlu1 %v853_v52, %s1625_s10  ;;  %707 = vrot.lane.b32.xlu0 %v705_v53, %s1628_s17  ;;  %v500_v52 = vmul.f32 %v499_v50, %v1762_v28  ;;  %v656_v53 = vstv %s1486_s2  ;;  %s1490_s2 = sld [smem:[#allocation3 + $0x22]]  ;;  %v1123_v45 = vmul.f32 %v1122_v41, %v1762_v28 }
  0xc7   :  { %v657_v55 = vmul.f32 %v656_v53, %v1762_v28  ;;  %v1288_v53 = vstv %s1504_s29  ;;  %s1971_s29 = sld [smem:[#allocation3 + $0x6]] }
  0xc8   :  { %v974_v33 = vstv %s1502_s22  ;;  %s1547_s22 = sld [smem:[#allocation3 + $0x5b]] }
  0xc9   :  { %v975_v38 = vmul.f32 %v974_v33, %v1762_v28 }
  0xca   :  { %716 = vrot.lane.b32.xlu1 %v714_v56, %s1627_s16  ;;  %568 = vrot.lane.b32.xlu0 %v566_v57, %s1629_s1  ;;  %v930_v56 = vmul.f32 %v929_v54, %v1762_v28  ;;  %v1086_v57 = vstv %s1468_s25  ;;  %s1497_s25 = sld [smem:[#allocation3 + $0x29]] }
  0xcb   :  { %v1087_v59 = vmul.f32 %v1086_v57, %v1762_v28  ;;  %v1289_v57 = vmul.f32 %v1288_v53, %v1762_v28 }
  0xce   :  { %1146 = vrot.lane.b32.xlu1 %v1144_v60, %s1626_s11  ;;  %998 = vrot.lane.b32.xlu0 %v996_v61, %s1625_s10  ;;  %v509_v60 = vmul.f32 %v508_v58, %v1762_v28  ;;  %v517_v61 = vstv %s1499_s28  ;;  %s1550_s28 = sld [smem:[#allocation3 + $0x5e]] }
  0xcf   :  { %v518_v63 = vmul.f32 %v517_v61, %v1762_v28 }
  0xd0   :  { %v1279_v46 = vstv %s1497_s25  ;;  %s1965_s25 = sld [smem:[#allocation3 + $0x3]] }
  0xd1   :  { %v1280_v50 = vmul.f32 %v1279_v46, %v1762_v28 }
  0xd2   :  { %577 = vrot.lane.b32.xlu1 %v575_v0, %s1630_s27  ;;  %864 = vrot.lane.b32.xlu0 %v862_v1, %s1628_s17  ;;  %v939_v0 = vmul.f32 %v938_v62, %v1762_v28  ;;  %v947_v1 = vstv %s1481_s30  ;;  %s1545_s30 = sld [smem:[#allocation3 + $0x59]] }
  0xd3   :  { %v948_v3 = vmul.f32 %v947_v1, %v1762_v28  ;;  %v1327_v1 = vstv %s1539_s7  ;;  %s1633_s7 = smov 126  }
  0xd6   :  { %1007 = vrot.lane.b32.xlu1 %v1005_v5, %s1628_s17  ;;  %725 = vrot.lane.b32.xlu0 %v723_v6, %s1629_s1  ;;  %v805_v5 = vmul.f32 %v804_v2, %v1762_v28  ;;  %v1243_v6 = vstv %s1469_s6  ;;  %s1552_s6 = sld [smem:[#allocation3 + $0x60]] }
  0xd7   :  { %v1244_v8 = vmul.f32 %v1243_v6, %v1762_v28  ;;  %v1328_v6 = vmul.f32 %v1327_v1, %v1706_v35 }
  0xd8   :  { %v1179_v58 = vstv %s1545_s30  ;;  %s1977_s30 = sld [smem:[#allocation3 + $0x37]] }
  0xd9   :  { %v1180_v62 = vmul.f32 %v1179_v58, %v1706_v35 }
  0xda   :  { %1303 = vrot.lane.b32.xlu1 %v1301_v9, %s1626_s11  ;;  %1155 = vrot.lane.b32.xlu0 %v1153_v10, %s1625_s10  ;;  %v666_v9 = vmul.f32 %v665_v7, %v1762_v28  ;;  %v674_v10 = vstv %s1500_s8  ;;  %s1553_s8 = sld [smem:[#allocation3 + $0x61]] }
  0xdb   :  { %v675_v12 = vmul.f32 %v674_v10, %v1762_v28 }
  0xde   :  { %734 = vrot.lane.b32.xlu1 %v732_v13, %s1630_s27  ;;  %873 = vrot.lane.b32.xlu0 %v871_v14, %s1627_s16  ;;  %v1096_v13 = vmul.f32 %v1095_v11, %v1762_v28  ;;  %v1104_v14 = vstv %s1482_s12  ;;  %s1484_s12 = sld [smem:[#allocation3 + $0x1c]] }
  0xdf   :  { %v1105_v17 = vmul.f32 %v1104_v14, %v1762_v28  ;;  %v346_v14 = vstv %s1477_s13  ;;  %s1637_s13 = smov 122  }
  0xe0   :  { %v1345_v7 = vstv %s1553_s8  ;;  %s1634_s8 = smov 125  }
  0xe1   :  { %v1346_v11 = vmul.f32 %v1345_v7, %v1706_v35 }
  0xe2   :  { %1164 = vrot.lane.b32.xlu1 %v1162_v18, %s1628_s17  ;;  %1016 = vrot.lane.b32.xlu0 %v1014_v19, %s1627_s16  ;;  %v814_v18 = vmul.f32 %v813_v16, %v1762_v28  ;;  %v822_v19 = vstv %s1494_s14  ;;  %s1498_s14 = sld [smem:[#allocation3 + $0x2a]] }
  0xe3   :  { %v823_v21 = vmul.f32 %v822_v19, %v1762_v28  ;;  %v347_v19 = vmul.f32 %v346_v14, %v1762_v28 }
  0xe6   :  { %882 = vrot.lane.b32.xlu1 %v880_v22, %s1629_s1  ;;  %1312 = vrot.lane.b32.xlu0 %v1310_v23, %s1625_s10  ;;  %v957_v22 = vmul.f32 %v956_v20, %v1762_v28  ;;  %v965_v23 = vstv %s1495_s18  ;;  %s1519_s18 = sld [smem:[#allocation3 + $0x3f]] }
  0xe7   :  { %v966_v25 = vmul.f32 %v965_v23, %v1762_v28 }
  0xe8   :  { %v376_v20 = vstv %s1498_s14  ;;  %s1505_s14 = sld [smem:[#allocation3 + $0x31]] }
  0xea   :  { %1173 = vrot.lane.b32.xlu1 %v1171_v26, %s1627_s16  ;;  %1025 = vrot.lane.b32.xlu0 %v1023_v27, %s1629_s1  ;;  %v1253_v26 = vmul.f32 %v1252_v24, %v1762_v28  ;;  %v1261_v27 = vstv %s1483_s20  ;;  %s1533_s20 = sld [smem:[#allocation3 + $0x4d]]  ;;  %v377_v24 = vmul.f32 %v376_v20, %v1762_v28 }
  0xee   :  { %1321 = vrot.lane.b32.xlu0 %v1319_v30, %s1628_s17  ;;  %339 = vrot.lane.b32.xlu1 %v337_v31, %s1625_s10  ;;  %v1262_v31 = vmul.f32 %v1261_v27, %v1762_v28  ;;  %v391_v27 = vstv %s1512_s19 }
  0xef   :  { %v392_v33 = vmul.f32 %v391_v27, %v1706_v35 }
  0xf2   :  { %484 = vrot.lane.b32.xlu1 %v482_v34, %s1625_s10  ;;  %329 = vrot.lane.b32.xlu0 %v327_v36, %s1626_s11  ;;  %v831_v34 = vstv %s1501_s23  ;;  %s1540_s23 = sld [smem:[#allocation3 + $0x54]] }
  0xf6   :  { %493 = vrot.lane.b32.xlu1 %v491_v39, %s1628_s17  ;;  %475 = vrot.lane.b32.xlu0 %v473_v40, %s1626_s11  ;;  %v832_v39 = vmul.f32 %v831_v34, %v1762_v28  ;;  %v1270_v40 = vstv %s1490_s2  ;;  %v418_v34 = vstv %s1533_s20  ;;  %s1960_s2 = sld [smem:[#allocation3 + $0x34]] }
  0xf7   :  { %v419_v41 = vmul.f32 %v418_v34, %v1706_v35 }
  0xf8   :  { %v427_v46 = vstv %s1540_s23 }
  0xfa   :  { %789 = vrot.lane.b32.xlu1 %v787_v43, %s1626_s11  ;;  %632 = vrot.lane.b32.xlu0 %v630_v44, %s1626_s11  ;;  %v1271_v44 = vmul.f32 %v1270_v40, %v1762_v28 }
  0xfe   :  { %650 = vrot.lane.b32.xlu1 %v648_v47, %s1628_s17  ;;  %641 = vrot.lane.b32.xlu0 %v639_v48, %s1625_s10  ;;  %v1131_v47 = vstv %s1503_s26  ;;  %s1967_s26 = sld [smem:[#allocation3 + $0x4]] }
 0x102   :  { %798 = vrot.lane.b32.xlu1 %v796_v51, %s1625_s10  ;;  %502 = vrot.lane.b32.xlu0 %v500_v52, %s1627_s16  ;;  %v1132_v51 = vmul.f32 %v1131_v47, %v1762_v28  ;;  %v888_v52 = vstv %s1550_s28  ;;  %s1969_s28 = sld [smem:[#allocation3 + $0x5]] }
 0x106   :  { %659 = vrot.lane.b32.xlu1 %v657_v55, %s1627_s16  ;;  %932 = vrot.lane.b32.xlu0 %v930_v56, %s1626_s11  ;;  %v889_v56 = vmul.f32 %v888_v52, %v1706_v35  ;;  %v428_v52 = vmul.f32 %v427_v46, %v1706_v35 }
 0x10a   :  { %1089 = vrot.lane.b32.xlu1 %v1087_v59, %s1626_s11  ;;  %511 = vrot.lane.b32.xlu0 %v509_v60, %s1629_s1  ;;  %v1031_v59 = vstv %s1551_s5  ;;  %s2101_s5 = sld [smem:[#allocation5 + $0x1]] }
 0x10e   :  { %520 = vrot.lane.b32.xlu1 %v518_v63, %s1630_s27  ;;  %941 = vrot.lane.b32.xlu0 %v939_v0, %s1625_s10  ;;  %v1032_v63 = vmul.f32 %v1031_v59, %v1706_v35  ;;  %v1188_v0 = vstv %s1552_s6  ;;  %v322_v59 = vld [vmem:[#allocation2] sm:$0xf]  ;;  %s1632_s6 = smov 127  }
 0x112   :  { %950 = vrot.lane.b32.xlu1 %v948_v3, %s1628_s17  ;;  %807 = vrot.lane.b32.xlu0 %v805_v5, %s1628_s17  ;;  %v1189_v5 = vmul.f32 %v1188_v0, %v1706_v35 }
 0x116   :  { %1246 = vrot.lane.b32.xlu1 %v1244_v8, %s1626_s11  ;;  %668 = vrot.lane.b32.xlu0 %v666_v9, %s1629_s1  ;;  %v1336_v8 = vstv %s1546_s9  ;;  %s1635_s9 = smov 124  }
 0x11a   :  { %677 = vrot.lane.b32.xlu1 %v675_v12, %s1630_s27  ;;  %1098 = vrot.lane.b32.xlu0 %v1096_v13, %s1625_s10  ;;  %v1337_v12 = vmul.f32 %v1336_v8, %v1706_v35  ;;  %v356_v13 = vstv %s1484_s12  ;;  %s1636_s12 = smov 123  }
 0x11e   :  { %1107 = vrot.lane.b32.xlu1 %v1105_v17, %s1628_s17  ;;  %816 = vrot.lane.b32.xlu0 %v814_v18, %s1627_s16  ;;  %v357_v18 = vmul.f32 %v356_v13, %v1762_v28 }
 0x122   :  { %825 = vrot.lane.b32.xlu1 %v823_v21, %s1629_s1  ;;  %959 = vrot.lane.b32.xlu0 %v957_v22, %s1627_s16  ;;  %v366_v21 = vstv %s1491_s15 }
 0x126   :  { %968 = vrot.lane.b32.xlu1 %v966_v25, %s1629_s1  ;;  %1255 = vrot.lane.b32.xlu0 %v1253_v26, %s1625_s10  ;;  %v367_v25 = vmul.f32 %v366_v21, %v1762_v28  ;;  %v400_v26 = vstv %s1519_s18 }
 0x128   :  { %v1826_v29 = vpop.permute.xlu1 %541  ;;  %v1828_v30 = vpop.permute.xlu0 %532 }
 0x12a   :  { %1264 = vrot.lane.b32.xlu1 %v1262_v31, %s1628_s17  ;;  %1116 = vrot.lane.b32.xlu0 %v1114_v32, %s1627_s16  ;;  %v401_v32 = vmul.f32 %v400_v26, %v1706_v35 }
 0x12c   :  { %v1834_v36 = vpop.permute.xlu1 %698  ;;  %v1836_v37 = vpop.permute.xlu0 %689 }
 0x12e   :  { %977 = vrot.lane.b32.xlu1 %v975_v38, %s1630_s27  ;;  %834 = vrot.lane.b32.xlu0 %v832_v39, %s1630_s27  ;;  %v409_v38 = vstv %s1526_s21 }
 0x130   :  { %v1842_v42 = vpop.permute.xlu1 %559  ;;  %v1844_v43 = vpop.permute.xlu0 %550 }
 0x132   :  { %1273 = vrot.lane.b32.xlu1 %v1271_v44, %s1627_s16  ;;  %1125 = vrot.lane.b32.xlu0 %v1123_v45, %s1629_s1  ;;  %v410_v44 = vmul.f32 %v409_v38, %v1706_v35  ;;  %v436_v45 = vstv %s1547_s22  ;;  %v1631_v38 = vmov 1983009808  }
 0x134   :  { %v1850_v48 = vpop.permute.xlu1 %989  ;;  %v1852_v49 = vpop.permute.xlu0 %846 }
 0x136   :  { %1282 = vrot.lane.b32.xlu1 %v1280_v50, %s1629_s1  ;;  %1134 = vrot.lane.b32.xlu0 %v1132_v51, %s1630_s27  ;;  %v437_v51 = vmul.f32 %v436_v45, %v1706_v35 }
 0x138   :  { %v1858_v54 = vpop.permute.xlu1 %855  ;;  %v1860_v55 = vpop.permute.xlu0 %707 }
 0x13a   :  { %891 = vrot.lane.b32.xlu1 %v889_v56, %s1630_s27  ;;  %1291 = vrot.lane.b32.xlu0 %v1289_v57, %s1630_s27 }
 0x13c   :  { %v1866_v60 = vpop.permute.xlu1 %716  ;;  %v1868_v61 = vpop.permute.xlu0 %568 }
 0x13e   :  { %1182 = vrot.lane.b32.xlu1 %v1180_v62, %s1629_s1  ;;  %1034 = vrot.lane.b32.xlu0 %v1032_v63, %s1630_s27 }
 0x140   :  { %v1874_v2 = vpop.permute.xlu1 %1146  ;;  %v1876_v3 = vpop.permute.xlu0 %998 }
 0x142   :  { %1191 = vrot.lane.b32.xlu1 %v1189_v5, %s1630_s27  ;;  %1330 = vrot.lane.b32.xlu0 %v1328_v6, %s1627_s16 }
 0x144   :  { %v1882_v9 = vpop.permute.xlu1 %577  ;;  %v1884_v10 = vpop.permute.xlu0 %864 }
 0x146   :  { %1348 = vrot.lane.b32.xlu1 %v1346_v11, %s1630_s27  ;;  %1339 = vrot.lane.b32.xlu0 %v1337_v12, %s1629_s1 }
 0x148   :  { %v1890_v16 = vpop.permute.xlu1 %1007  ;;  %v1892_v17 = vpop.permute.xlu0 %725 }
 0x14a   :  { %359 = vrot.lane.b32.xlu1 %v357_v18, %s1627_s16  ;;  %349 = vrot.lane.b32.xlu0 %v347_v19, %s1628_s17 }
 0x14c   :  { %v1898_v22 = vpop.permute.xlu1 %1303  ;;  %v1900_v23 = vpop.permute.xlu0 %1155 }
 0x14e   :  { %379 = vrot.lane.b32.xlu1 %v377_v24, %s1630_s27  ;;  %369 = vrot.lane.b32.xlu0 %v367_v25, %s1629_s1 }
 0x150   :  { %v1906_v4 = vpop.permute.xlu1 %734  ;;  %v1908_v31 = vpop.permute.xlu0 %873 }
 0x152   :  { %403 = vrot.lane.b32.xlu1 %v401_v32, %s1625_s10  ;;  %394 = vrot.lane.b32.xlu0 %v392_v33, %s1626_s11  ;;  %s47_s10 = sld [smem:[#allocation3]]  ;;  %s1457_s11 = sld [smem:[#allocation3 + $0x1]] }
 0x154   :  { %v1914_v39 = vpop.permute.xlu1 %1164  ;;  %v1916_v40 = vpop.permute.xlu0 %1016 }
 0x155   :  { %2401 = vst [vmem:[#allocation10_spill] sm:$0xff] %v1914_v39 }
 0x156   :  { %421 = vrot.lane.b32.xlu1 %v419_v41, %s1627_s16  ;;  %412 = vrot.lane.b32.xlu0 %v410_v44, %s1628_s17  ;;  %v459_v41 = vunpack.c.l.s4 %v1631_v38  ;;  %s1948_s16 = sld [smem:[#allocation3 + $0x32]]  ;;  %s1950_s17 = sld [smem:[#allocation3 + $0x33]] }
 0x158   :  { %v1922_v47 = vpop.permute.xlu1 %882  ;;  %v1924_v50 = vpop.permute.xlu0 %1312  ;;  %v323_v62 = vstv %s47_s10  ;;  %v470_v25 = vstv %s1457_s11 }
 0x159   :  { %2402 = vst [vmem:[#allocation11_spill] sm:$0xff] %v1924_v50  ;;  %v324_v6 = vmul.f32 %v323_v62, %v322_v59  ;;  %v471_v27 = vmul.f32 %v470_v25, %v1762_v28  ;;  %v460_v59 = vunpack.c.0.s8 %v459_v41  ;;  %v840_v41 = vstv %s1960_s2 }
 0x15a   :  { %439 = vrot.lane.b32.xlu1 %v437_v51, %s1630_s27  ;;  %430 = vrot.lane.b32.xlu0 %v428_v52, %s1629_s1  ;;  %s1952_s1 = sld [smem:[#allocation3 + $0x2]]  ;;  %s1954_s27 = sld [smem:[#allocation3 + $0x35]] }
 0x15c   :  { %v1930_v53 = vpop.permute.xlu1 %1173  ;;  %v1932_v56 = vpop.permute.xlu0 %1025 }
 0x15d   :  { %2403 = vst [vmem:[#allocation12_spill] sm:$0xff] %v1930_v53  ;;  %2404 = vst [vmem:[#allocation13_spill] sm:$0xff] %v1932_v56 }
 0x160   :  { %v1934_v57 = vpop.permute.xlu0 %1321  ;;  %v340_v58 = vpop.permute.xlu1 %339  ;;  %v983_v38 = vstv %s1954_s27 }
 0x161   :  { %2405 = vst [vmem:[#allocation14_spill] sm:$0xff] %v1934_v57  ;;  %v341_v1 = vrot.slane %v340_v58, 2 }
 0x163   :  { %v343_v13 = vsel %vm342_vm8, %v340_v58, %v341_v1 }
 0x164   :  { %v485_v63 = vpop.permute.xlu1 %484  ;;  %v330_v0 = vpop.permute.xlu0 %329 }
 0x165   :  { %v331_v5 = vrot.slane %v330_v0, 2  ;;  %v486_v34 = vrot.slane %v485_v63, 2 }
 0x167   :  { %v333_v7 = vsel %vm332_vm7, %v330_v0, %v331_v5  ;;  %v487_v51 = vsel %vm342_vm8, %v485_v63, %v486_v34 }
 0x168   :  { %v335_v8 = vadd.f32 %v333_v7, %v324_v6  ;;  %v494_v11 = vpop.permute.xlu1 %493  ;;  %v476_v12 = vpop.permute.xlu0 %475 }
 0x169   :  { %v477_v20 = vrot.slane %v476_v12, 2  ;;  %v495_v52 = vrot.slane %v494_v11, 2 }
 0x16a   :  { %v1938_v14 = vadd.f32 %v343_v13, %v335_v8  ;;  %v1980_v8 = vsub.s32 %v460_v59, %v1681_v15  ;;  %v526_v13 = vstv %s1948_s16  ;;  %v1241_v15 = vstv %s1971_s29 }
 0x16b   :  { %v478_v26 = vsel %vm332_vm7, %v476_v12, %v477_v20  ;;  %v496_v1 = vsel %vm352_vm10, %v494_v11, %v495_v52  ;;  %v627_v20 = vstv %s1952_s1 }
 0x16c   :  { %2406 = vst [vmem:[#allocation15_spill] sm:$0xff] %v1938_v14  ;;  %v1940_v18 = vpop.permute.xlu1 %789  ;;  %v633_v19 = vpop.permute.xlu0 %632  ;;  %v480_v44 = vadd.f32 %v478_v26, %v471_v27  ;;  %v683_v26 = vstv %s1950_s17  ;;  %v543_v14 = vrot.slane %v1826_v29, 2 }
 0x16d   :  { %v634_v5 = vrot.slane %v633_v19, 2 }
 0x16e   :  { %v489_v62 = vadd.f32 %v487_v51, %v480_v44  ;;  %v1140_v44 = vstv %s1962_s24  ;;  %v784_v51 = vstv %s1965_s25 }
 0x16f   :  { %v635_v52 = vsel %vm332_vm7, %v633_v19, %v634_v5  ;;  %v527_v19 = vmul.f32 %v526_v13, %v1706_v35  ;;  %v2051_v56 = vmul.f32 %v1140_v44, %v1706_v35 }
 0x170   :  { %v1942_v21 = vpop.permute.xlu1 %650  ;;  %v642_v24 = vpop.permute.xlu0 %641  ;;  %v498_v12 = vadd.f32 %v496_v1, %v489_v62  ;;  %v628_v62 = vmul.f32 %v627_v20, %v1762_v28  ;;  %v1084_v1 = vstv %s1969_s28  ;;  %v2007_v20 = vmul.f32 %v784_v51, %v1762_v28 }
 0x171   :  { %v643_v11 = vrot.slane %v642_v24, 2  ;;  %v2022_v51 = vmul.f32 %v1241_v15, %v1762_v28 }
 0x172   :  { %v637_v57 = vadd.f32 %v635_v52, %v628_v62  ;;  %v2016_v52 = vmul.f32 %v1084_v1, %v1762_v28  ;;  %v552_v62 = vrot.slane %v1844_v43, 2  ;;  %v2030_v1 = vmul.f32 %v983_v38, %v1706_v35 }
 0x174   :  { %v1946_v32 = vpop.permute.xlu1 %798  ;;  %v503_v33 = vpop.permute.xlu0 %502  ;;  %v553_v38 = vsel %vm352_vm10, %v1844_v43, %v552_v62  ;;  %v579_v43 = vrot.slane %v1882_v9, 2 }
 0x175   :  { %v504_v58 = vrot.slane %v503_v33, 2 }
 0x177   :  { %v505_v6 = vsel %vm362_vm9, %v503_v33, %v504_v58  ;;  %v927_v58 = vstv %s1967_s26 }
 0x178   :  { %v1956_v45 = vpop.permute.xlu1 %659  ;;  %v1958_v46 = vpop.permute.xlu0 %932  ;;  %v507_v27 = vadd.f32 %v505_v6, %v498_v12  ;;  %v534_v6 = vrot.slane %v1828_v30, 2 }
 0x17c   :  { %v1973_v0 = vpop.permute.xlu1 %1089  ;;  %v512_v63 = vpop.permute.xlu0 %511 }
 0x17d   :  { %v513_v7 = vrot.slane %v512_v63, 2 }
 0x17f   :  { %v514_v25 = vsel %vm372_vm11, %v512_v63, %v513_v7  ;;  %v644_v7 = vsel %vm342_vm8, %v642_v24, %v643_v11  ;;  %v661_v24 = vrot.slane %v1956_v45, 2  ;;  %v1297_v11 = vstv %s1977_s30 }
 0x180   :  { %v521_v33 = vpop.permute.xlu1 %520  ;;  %v1986_v34 = vpop.permute.xlu0 %941  ;;  %v516_v63 = vadd.f32 %v514_v25, %v507_v27  ;;  %v652_v25 = vrot.slane %v1942_v21, 2  ;;  %v646_v27 = vadd.f32 %v644_v7, %v637_v57  ;;  %v544_v57 = vsel %vm342_vm8, %v1826_v29, %v543_v14 }
 0x181   :  { %v522_v59 = vrot.slane %v521_v33, 2  ;;  %v700_v29 = vrot.slane %v1834_v36, 2  ;;  %v691_v14 = vrot.slane %v1836_v37, 2 }
 0x182   :  { %v653_v15 = vsel %vm352_vm10, %v1942_v21, %v652_v25  ;;  %v848_v21 = vrot.slane %v1852_v49, 2 }
 0x183   :  { %v523_v12 = vsel %vm382_vm12, %v521_v33, %v522_v59  ;;  %v2013_v33 = vmul.f32 %v927_v58, %v1762_v28  ;;  %v535_v59 = vsel %vm332_vm7, %v1828_v30, %v534_v6  ;;  %v561_v30 = vrot.slane %v1842_v42, 2 }
 0x184   :  { %v525_v5 = vadd.f32 %v523_v12, %v516_v63  ;;  %v2002_v53 = vpop.permute.xlu1 %950  ;;  %v2004_v50 = vpop.permute.xlu0 %807  ;;  %v684_v63 = vmul.f32 %v683_v26, %v1706_v35  ;;  %v662_v28 = vsel %vm362_vm9, %v1956_v45, %v661_v24  ;;  %v655_v6 = vadd.f32 %v653_v15, %v646_v27 }
 0x185   :  { %v562_v27 = vsel %vm362_vm9, %v1842_v42, %v561_v30  ;;  %v857_v42 = vrot.slane %v1858_v54, 2 }
 0x186   :  { %v528_v13 = vadd.f32 %v527_v19, %v525_v5  ;;  %v2033_v19 = vmul.f32 %v840_v41, %v1706_v35  ;;  %v991_v41 = vrot.slane %v1850_v48, 2  ;;  %v664_v25 = vadd.f32 %v662_v28, %v655_v6 }
 0x187   :  { %v1148_v6 = vrot.slane %v1874_v2, 2 }
 0x188   :  { %v537_v7 = vadd.f32 %v535_v59, %v528_v13  ;;  %v2027_v58 = vpop.permute.xlu1 %1246  ;;  %v669_v12 = vpop.permute.xlu0 %668  ;;  %v570_v13 = vrot.slane %v1868_v61, 2  ;;  %v2065_v44 = vsel %vm332_vm7, %v1850_v48, %v991_v41  ;;  %v718_v48 = vrot.slane %v1866_v60, 2 }
 0x189   :  { %v670_v26 = vrot.slane %v669_v12, 2 }
 0x18a   :  { %v546_v5 = vadd.f32 %v544_v57, %v537_v7  ;;  %v2057_v57 = vmul.f32 %v1297_v11, %v1706_v35  ;;  %v701_v7 = vsel %vm342_vm8, %v1834_v36, %v700_v29  ;;  %v571_v30 = vsel %vm372_vm11, %v1868_v61, %v570_v13 }
 0x18b   :  { %v671_v59 = vsel %vm372_vm11, %v669_v12, %v670_v26  ;;  %v692_v12 = vsel %vm332_vm7, %v1836_v37, %v691_v14  ;;  %v2073_v11 = vsel %vm332_vm7, %v1852_v49, %v848_v21  ;;  %v709_v36 = vrot.slane %v1860_v55, 2 }
 0x18c   :  { %v555_v45 = vadd.f32 %v553_v38, %v546_v5  ;;  %v678_v24 = vpop.permute.xlu1 %677  ;;  %v2048_v39 = vpop.permute.xlu0 %1098  ;;  %v673_v15 = vadd.f32 %v671_v59, %v664_v25  ;;  %v580_v61 = vsel %vm382_vm12, %v1882_v9, %v579_v43  ;;  %v791_v5 = vrot.slane %v1940_v18, 2 }
 0x18d   :  { %v679_v62 = vrot.slane %v678_v24, 2  ;;  %v1000_v38 = vrot.slane %v1876_v3, 2  ;;  %v934_v49 = vrot.slane %v1958_v46, 2  ;;  %v2089_v59 = vsel %vm342_vm8, %v1858_v54, %v857_v42 }
 0x18e   :  { %v564_v28 = vadd.f32 %v562_v27, %v555_v45  ;;  %v866_v21 = vrot.slane %v1884_v10, 2  ;;  %v1009_v25 = vrot.slane %v1890_v16, 2  ;;  %v727_v45 = vrot.slane %v1892_v17, 2 }
 0x18f   :  { %v680_v35 = vsel %vm382_vm12, %v678_v24, %v679_v62  ;;  %v710_v9 = vsel %vm352_vm10, %v1860_v55, %v709_v36  ;;  %v800_v24 = vrot.slane %v1946_v32, 2  ;;  %v719_v54 = vsel %vm362_vm9, %v1866_v60, %v718_v48 }
 0x190   :  { %v682_v37 = vadd.f32 %v680_v35, %v673_v15  ;;  %v2076_v26 = vpop.permute.xlu1 %1107  ;;  %v817_v29 = vpop.permute.xlu0 %816  ;;  %v573_v14 = vadd.f32 %v571_v30, %v564_v28  ;;  %v2107_v15 = vsel %vm332_vm7, %v1874_v2, %v1148_v6  ;;  %v792_v55 = vsel %vm332_vm7, %v1940_v18, %v791_v5 }
 0x191   :  { %v2114_v28 = vsel %vm342_vm8, %v1876_v3, %v1000_v38  ;;  %v935_v42 = vsel %vm332_vm7, %v1958_v46, %v934_v49  ;;  %v952_v30 = vrot.slane %v2002_v53, 2  ;;  %v2123_v60 = vsel %vm352_vm10, %v1884_v10, %v866_v21 }
 0x192   :  { %v685_v41 = vadd.f32 %v684_v63, %v682_v37  ;;  %v2085_v13 = vadd.f32 %v580_v61, %v573_v14  ;;  %v2127_v2 = vsel %vm352_vm10, %v1890_v16, %v1009_v25  ;;  %v728_v3 = vsel %vm372_vm11, %v1892_v17, %v727_v45 }
 0x193   :  { %v809_v18 = vrot.slane %v2004_v50, 2  ;;  %v736_v46 = vrot.slane %v1906_v4, 2  ;;  %v801_v36 = vsel %vm342_vm8, %v1946_v32, %v800_v24  ;;  %v937_v48 = vadd.f32 %v935_v42, %v2013_v33 }
 0x194   :  { %v694_v27 = vadd.f32 %v692_v12, %v685_v41  ;;  %v826_v43 = vpop.permute.xlu1 %825  ;;  %v960_v63 = vpop.permute.xlu0 %959  ;;  %v2099_v62 = vrot.slane %v2085_v13, %v1980_v8  ;;  %v943_v12 = vrot.slane %v1986_v34, 2  ;;  %v818_v6 = vrot.slane %v817_v29, 2 }
 0x195   :  { %v961_v61 = vrot.slane %v960_v63, 2  ;;  %v1091_v17 = vrot.slane %v1973_v0, 2  ;;  %v953_v5 = vsel %vm352_vm10, %v2002_v53, %v952_v30  ;;  %v810_v32 = vsel %vm352_vm10, %v2004_v50, %v809_v18 }
 0x196   :  { %v703_v35 = vadd.f32 %v701_v7, %v694_v27  ;;  %612 = vrot.lane.b32.xlu0 %v2099_v62, %s1632_s6  ;;  %v794_v7 = vadd.f32 %v792_v55, %v2007_v20  ;;  %v944_v16 = vsel %vm342_vm8, %v1986_v34, %v943_v12  ;;  %v44_v20 = vstv %s2101_s5 }
 0x197   :  { %v827_v49 = vrot.slane %v826_v43, 2  ;;  %1582 = vrcp.f32 %v44_v20  ;;  %v946_v33 = vadd.f32 %v944_v16, %v937_v48  ;;  %v1100_v25 = vrot.slane %v2048_v39, 2 }
 0x198   :  { %v712_v37 = vadd.f32 %v710_v9, %v703_v35  ;;  %v969_v10 = vpop.permute.xlu1 %968  ;;  %v1256_v14 = vpop.permute.xlu0 %1255  ;;  %v803_v21 = vadd.f32 %v801_v36, %v794_v7  ;;  %v737_v24 = vsel %vm382_vm12, %v1906_v4, %v736_v46  ;;  %v875_v53 = vrot.slane %v1908_v31, 2 }
 0x199   :  { %v970_v41 = vrot.slane %v969_v10, 2  ;;  %v819_v27 = vsel %vm362_vm9, %v817_v29, %v818_v6  ;;  %v955_v50 = vadd.f32 %v953_v5, %v946_v33  ;;  %v1248_v12 = vrot.slane %v2027_v58, 2 }
 0x19a   :  { %v721_v38 = vadd.f32 %v719_v54, %v712_v37  ;;  %v962_v54 = vsel %vm362_vm9, %v960_v63, %v961_v61  ;;  %v812_v55 = vadd.f32 %v810_v32, %v803_v21  ;;  %v1092_v30 = vsel %vm332_vm7, %v1973_v0, %v1091_v17 }
 0x19b   :  { %v1109_v35 = vrot.slane %v2076_v26, 2  ;;  %v971_v4 = vsel %vm372_vm11, %v969_v10, %v970_v41  ;;  %v1101_v29 = vsel %vm342_vm8, %v2048_v39, %v1100_v25  ;;  %v964_v63 = vadd.f32 %v962_v54, %v955_v50 }
 0x19c   :  { %v1265_v34 = vpop.permute.xlu1 %1264  ;;  %v1117_v45 = vpop.permute.xlu0 %1116  ;;  %v730_v9 = vadd.f32 %v728_v3, %v721_v38  ;;  %v828_v3 = vsel %vm372_vm11, %v826_v43, %v827_v49  ;;  %v821_v18 = vadd.f32 %v819_v27, %v812_v55  ;;  %v1257_v37 = vrot.slane %v1256_v14, 2 }
 0x19d   :  { %v1118_v48 = vrot.slane %v1117_v45, 2  ;;  %v1094_v6 = vadd.f32 %v1092_v30, %v2016_v52  ;;  %v1249_v43 = vsel %vm332_vm7, %v2027_v58, %v1248_v12  ;;  %v973_v61 = vadd.f32 %v971_v4, %v964_v63 }
 0x19e   :  { %v2152_v42 = vadd.f32 %v737_v24, %v730_v9  ;;  %v830_v10 = vadd.f32 %v828_v3, %v821_v18  ;;  %v1110_v39 = vsel %vm352_vm10, %v2076_v26, %v1109_v35  ;;  %v1266_v17 = vrot.slane %v1265_v34, 2 }
 0x19f   :  { %v1305_v20 = vrot.slane %v1898_v22, 2  ;;  %v1103_v52 = vadd.f32 %v1101_v29, %v1094_v6  ;;  %v1258_v33 = vsel %vm342_vm8, %v1256_v14, %v1257_v37  ;;  %v1119_v25 = vsel %vm362_vm9, %v1117_v45, %v1118_v48  ;;  %v2407_v37 = vld [vmem:[#allocation13_spill] sm:$0xff] }
 0x1a0   :  { %v978_v46 = vpop.permute.xlu1 %977  ;;  %v835_v7 = vpop.permute.xlu0 %834  ;;  %v2163_v36 = vrot.slane %v2152_v42, %v1980_v8  ;;  %v1251_v26 = vadd.f32 %v1249_v43, %v2022_v51  ;;  %v1157_v55 = vrot.slane %v1900_v23, 2  ;;  %v876_v12 = vsel %vm362_vm9, %v1908_v31, %v875_v53 }
 0x1a1   :  { %v979_v0 = vrot.slane %v978_v46, 2  ;;  %v836_v16 = vrot.slane %v835_v7, 2  ;;  %v1583_v21 = vpop.eup %1582  ;;  %v1112_v27 = vadd.f32 %v1110_v39, %v1103_v52  ;;  %v1267_v30 = vsel %vm352_vm10, %v1265_v34, %v1266_v17 }
 0x1a2   :  { %769 = vrot.lane.b32.xlu1 %v2163_v36, %s1633_s7  ;;  %1559 = vpush %v1583_v21  ;;  %v1260_v45 = vadd.f32 %v1258_v33, %v1251_v26 }
 0x1a3   :  { %v980_v5 = vsel %vm382_vm12, %v978_v46, %v979_v0  ;;  %v837_v38 = vsel %vm382_vm12, %v835_v7, %v836_v16  ;;  %v1121_v35 = vadd.f32 %v1119_v25, %v1112_v27  ;;  %v884_v7 = vrot.slane %v1922_v47, 2  ;;  %v2410_v27 = vld [vmem:[#allocation12_spill] sm:$0xff] }
 0x1a4   :  { %v982_v32 = vadd.f32 %v980_v5, %v973_v61  ;;  %v839_v49 = vadd.f32 %v837_v38, %v830_v10  ;;  %v1274_v58 = vpop.permute.xlu1 %1273  ;;  %v1126_v41 = vpop.permute.xlu0 %1125  ;;  %v1269_v46 = vadd.f32 %v1267_v30, %v1260_v45 }
 0x1a5   :  { %v1275_v9 = vrot.slane %v1274_v58, 2  ;;  %v1127_v24 = vrot.slane %v1126_v41, 2 }
 0x1a6   :  { %v985_v54 = vadd.f32 %v2030_v1, %v982_v32  ;;  %v842_v50 = vadd.f32 %v2033_v19, %v839_v49  ;;  %v1018_v19 = vrot.slane %v1916_v40, 2 }
 0x1a7   :  { %v1128_v14 = vsel %vm372_vm11, %v1126_v41, %v1127_v24  ;;  %v1276_v29 = vsel %vm362_vm9, %v1274_v58, %v1275_v9  ;;  %v885_v58 = vsel %vm372_vm11, %v1922_v47, %v884_v7  ;;  %v2409_v41 = vld [vmem:[#allocation11_spill] sm:$0xff] }
 0x1a8   :  { %v994_v3 = vadd.f32 %v2065_v44, %v985_v54  ;;  %v851_v51 = vadd.f32 %v2073_v11, %v842_v50  ;;  %v1283_v4 = vpop.permute.xlu1 %1282  ;;  %v1135_v1 = vpop.permute.xlu0 %1134  ;;  %v1130_v53 = vadd.f32 %v1128_v14, %v1121_v35  ;;  %v1027_v44 = vrot.slane %v2407_v37, 2  ;;  %v2411_v35 = vld [vmem:[#allocation14_spill] sm:$0xff] }
 0x1a9   :  { %v1284_v18 = vrot.slane %v1283_v4, 2  ;;  %v1136_v63 = vrot.slane %v1135_v1, 2  ;;  %v1278_v0 = vadd.f32 %v1276_v29, %v1269_v46  ;;  %v1175_v54 = vrot.slane %v2410_v27, 2 }
 0x1aa   :  { %v1003_v31 = vadd.f32 %v2114_v28, %v994_v3  ;;  %v860_v34 = vadd.f32 %v2089_v59, %v851_v51  ;;  %v2408_v28 = vld [vmem:[#allocation10_spill] sm:$0xff]  ;;  %v1019_v59 = vsel %vm362_vm9, %v1916_v40, %v1018_v19  ;;  %v1323_v3 = vrot.slane %v2411_v35, 2 }
 0x1ab   :  { %v1285_v11 = vsel %vm372_vm11, %v1283_v4, %v1284_v18  ;;  %v1137_v48 = vsel %vm382_vm12, %v1135_v1, %v1136_v63  ;;  %v1166_v39 = vrot.slane %v2408_v28, 2 }
 0x1ac   :  { %v1139_v16 = vadd.f32 %v1137_v48, %v1130_v53  ;;  %v892_v6 = vpop.permute.xlu1 %891  ;;  %v869_v43 = vadd.f32 %v2123_v60, %v860_v34  ;;  %v1292_v10 = vpop.permute.xlu0 %1291  ;;  %v1012_v61 = vadd.f32 %v2127_v2, %v1003_v31  ;;  %v1287_v38 = vadd.f32 %v1285_v11, %v1278_v0 }
 0x1ad   :  { %v893_v17 = vrot.slane %v892_v6, 2  ;;  %v1293_v5 = vrot.slane %v1292_v10, 2  ;;  %v1314_v60 = vrot.slane %v2409_v41, 2  ;;  %v1028_v2 = vsel %vm372_vm11, %v2407_v37, %v1027_v44 }
 0x1ae   :  { %v1142_v52 = vadd.f32 %v2051_v56, %v1139_v16  ;;  %v878_v32 = vadd.f32 %v876_v12, %v869_v43  ;;  %v1021_v49 = vadd.f32 %v1019_v59, %v1012_v61  ;;  %v1158_v56 = vsel %vm342_vm8, %v1900_v23, %v1157_v55 }
 0x1af   :  { %v1294_v21 = vsel %vm382_vm12, %v1292_v10, %v1293_v5  ;;  %v894_v47 = vsel %vm382_vm12, %v892_v6, %v893_v17  ;;  %v1306_v12 = vsel %vm332_vm7, %v1898_v22, %v1305_v20  ;;  %v1167_v45 = vsel %vm352_vm10, %v2408_v28, %v1166_v39 }
 0x1b0   :  { %v1151_v33 = vadd.f32 %v2107_v15, %v1142_v52  ;;  %v887_v40 = vadd.f32 %v885_v58, %v878_v32  ;;  %v1296_v25 = vadd.f32 %v1294_v21, %v1287_v38  ;;  %v1183_v9 = vpop.permute.xlu1 %1182  ;;  %v1035_v24 = vpop.permute.xlu0 %1034  ;;  %v1030_v26 = vadd.f32 %v1028_v2, %v1021_v49 }
 0x1b1   :  { %v1036_v50 = vrot.slane %v1035_v24, 2  ;;  %v1184_v23 = vrot.slane %v1183_v9, 2  ;;  %v1315_v51 = vsel %vm342_vm8, %v2409_v41, %v1314_v60  ;;  %v1324_v34 = vsel %vm352_vm10, %v2411_v35, %v1323_v3 }
 0x1b2   :  { %v896_v30 = vadd.f32 %v894_v47, %v887_v40  ;;  %v1299_v15 = vadd.f32 %v2057_v57, %v1296_v25  ;;  %v1160_v14 = vadd.f32 %v1158_v56, %v1151_v33  ;;  %v1176_v57 = vsel %vm362_vm9, %v2410_v27, %v1175_v54 }
 0x1b3   :  { %v1037_v55 = vsel %vm382_vm12, %v1035_v24, %v1036_v50  ;;  %v1185_v53 = vsel %vm372_vm11, %v1183_v9, %v1184_v23  ;;  %v596_v17 = vcombine.high %v2085_v13, %v2085_v13  ;;  %v611_v58 = vcombine.high %v2099_v62, %v2099_v62 }
 0x1b4   :  { %v1308_v4 = vadd.f32 %v1306_v12, %v1299_v15  ;;  %v1169_v1 = vadd.f32 %v1167_v45, %v1160_v14  ;;  %v1039_v19 = vadd.f32 %v1037_v55, %v1030_v26  ;;  %v1192_v29 = vpop.permute.xlu1 %1191  ;;  %v1331_v22 = vpop.permute.xlu0 %1330  ;;  %v905_v63 = vrot.slane %v896_v30, %v1980_v8 }
 0x1b5   :  { %v1193_v20 = vrot.slane %v1192_v29, 2  ;;  %v1332_v18 = vrot.slane %v1331_v22, 2  ;;  %v610_v32 = vrot.slane %v596_v17, %v1980_v8  ;;  %v898_v49 = vcombine.high %v896_v30, %v896_v30  ;;  %v2412_v30 = vld [vmem:[#allocation15_spill] sm:$0xff] }
 0x1b6   :  { %v1178_v46 = vadd.f32 %v1176_v57, %v1169_v1  ;;  %v1317_v31 = vadd.f32 %v1315_v51, %v1308_v4  ;;  %914 = vrot.lane.b32.xlu0 %v905_v63, %s1634_s8  ;;  %v1060_v7 = vrot.slane %v1039_v19, %v1980_v8  ;;  %v768_v13 = vcombine.high %v2163_v36, %v2163_v36  ;;  %v386_v1 = vld [vmem:[#allocation2 + $0x6] sm:$0xf] }
 0x1b7   :  { %v1194_v0 = vsel %vm382_vm12, %v1192_v29, %v1193_v20  ;;  %v1333_v16 = vsel %vm362_vm9, %v1331_v22, %v1332_v18  ;;  %v753_v41 = vcombine.high %v2152_v42, %v2152_v42  ;;  %v912_v60 = vrot.slane %v898_v49, %v1980_v8 }
 0x1b8   :  { %v1187_v37 = vadd.f32 %v1185_v53, %v1178_v46  ;;  %v1326_v44 = vadd.f32 %v1324_v34, %v1317_v31  ;;  %v1349_v11 = vpop.permute.xlu1 %1348  ;;  %v1340_v48 = vpop.permute.xlu0 %1339  ;;  %1069 = vrot.lane.b32.xlu1 %v1060_v7, %s1635_s9  ;;  %v1053_v21 = vcombine.high %v1039_v19, %v1039_v19  ;;  %v913_v33 = vcombine.high %v905_v63, %v905_v63 }
 0x1b9   :  { %v1350_v6 = vrot.slane %v1349_v11, 2  ;;  %v1341_v43 = vrot.slane %v1340_v48, 2  ;;  %v767_v2 = vrot.slane %v753_v41, %v1980_v8  ;;  %v1068_v40 = vcombine.high %v1060_v7, %v1060_v7 }
 0x1ba   :  { %v1196_v10 = vadd.f32 %v1194_v0, %v1187_v37  ;;  %v1335_v61 = vadd.f32 %v1333_v16, %v1326_v44  ;;  %v1067_v42 = vrot.slane %v1053_v21, %v1980_v8  ;;  %v387_v19 = vstv %s1505_s14 }
 0x1bb   :  { %v1342_v28 = vsel %vm372_vm11, %v1340_v48, %v1341_v43  ;;  %v1351_v5 = vsel %vm382_vm12, %v1349_v11, %v1350_v6  ;;  %v388_v57 = vmul.f32 %v387_v19, %v386_v1 }
 0x1bc   :  { %v1344_v39 = vadd.f32 %v1342_v28, %v1335_v61  ;;  %v1217_v59 = vrot.slane %v1196_v10, %v1980_v8  ;;  %v1210_v62 = vcombine.high %v1196_v10, %v1196_v10  ;;  %v350_v56 = vpop.permute.xlu0 %349  ;;  %v360_v54 = vpop.permute.xlu1 %359 }
 0x1bd   :  { %v351_v27 = vrot.slane %v350_v56, 2  ;;  %v361_v12 = vrot.slane %v360_v54, 2 }
 0x1be   :  { %v1353_v38 = vadd.f32 %v1351_v5, %v1344_v39  ;;  %1226 = vrot.lane.b32.xlu0 %v1217_v59, %s1636_s12  ;;  %v1224_v36 = vrot.slane %v1210_v62, %v1980_v8  ;;  %v1225_v9 = vcombine.high %v1217_v59, %v1217_v59  ;;  %v321_v5 = vld [vmem:[%s2389_s3] sm:$0x3]  ;;  %s2340_s3 = sld [smem:[#allocation5]] }
 0x1bf   :  { %v353_v47 = vsel %vm352_vm10, %v350_v56, %v351_v27  ;;  %v363_v45 = vsel %vm362_vm9, %v360_v54, %v361_v12  ;;  %vm583_vm13 = vcmp.ge.s32.totalorder %v321_v5, 2  ;;  %vm445_vm14 = vcmp.ge.s32.totalorder %v321_v5, 3 }
 0x1c0   :  { %v1374_v52 = vrot.slane %v1353_v38, %v1980_v8  ;;  %v1367_v25 = vcombine.high %v1353_v38, %v1353_v38  ;;  %v370_v50 = vpop.permute.xlu0 %369  ;;  %v355_v15 = vadd.f32 %v353_v47, %v2412_v30  ;;  %v380_v35 = vpop.permute.xlu1 %379  ;;  %vm740_vm15 = vcmp.ge.s32.totalorder %v321_v5, 1 }
 0x1c1   :  { %v371_v14 = vrot.slane %v370_v50, 2  ;;  %v381_v55 = vrot.slane %v380_v35, 2  ;;  %vm1040_vm1 = vcmp.lt.s32.totalorder %v321_v5, 15 }
 0x1c2   :  { %1383 = vrot.lane.b32.xlu1 %v1374_v52, %s1637_s13  ;;  %616 = vrot.lane.b32.xlu0 %v610_v32, %s1632_s6  ;;  %v1382_v24 = vcombine.high %v1374_v52, %v1374_v52  ;;  %v1381_v26 = vrot.slane %v1367_v25, %v1980_v8  ;;  %v365_v3 = vadd.f32 %v363_v45, %v355_v15 }
 0x1c3   :  { %v373_v23 = vsel %vm372_vm11, %v370_v50, %v371_v14  ;;  %v383_v4 = vsel %vm382_vm12, %v380_v35, %v381_v55 }
 0x1c4   :  { %v375_v51 = vadd.f32 %v373_v23, %v365_v3  ;;  %v395_v29 = vpop.permute.xlu0 %394  ;;  %v404_v20 = vpop.permute.xlu1 %403 }
 0x1c5   :  { %v396_v18 = vrot.slane %v395_v29, 2  ;;  %v405_v31 = vrot.slane %v404_v20, 2 }
 0x1c6   :  { %614 = vrot.lane.b32.xlu1 %v611_v58, %s1632_s6  ;;  %771 = vrot.lane.b32.xlu0 %v768_v13, %s1633_s7  ;;  %v385_v22 = vadd.f32 %v383_v4, %v375_v51  ;;  %v1638_v13 = vmov 0  }
 0x1c7   :  { %v397_v34 = vsel %vm332_vm7, %v395_v29, %v396_v18  ;;  %v406_v37 = vsel %vm342_vm8, %v404_v20, %v405_v31  ;;  %v584_v41 = vsel %vm583_vm13, 1, %v1638_v13  ;;  %v741_v27 = vsel %vm740_vm15, 1, %v1638_v13 }
 0x1c8   :  { %v389_v63 = vadd.f32 %v388_v57, %v385_v22  ;;  %v413_v46 = vpop.permute.xlu0 %412  ;;  %v422_v7 = vpop.permute.xlu1 %421  ;;  %v1041_v35 = vsel %vm1040_vm1, 1, %v1638_v13  ;;  %vm920_vm8 = vcmask 1022976   ;;  %vm1232_vm15 = vcmask 1006592  }
 0x1c9   :  { %v414_v44 = vrot.slane %v413_v46, 2  ;;  %v423_v0 = vrot.slane %v422_v7, 2 }
 0x1ca   :  { %773 = vrot.lane.b32.xlu1 %v767_v2, %s1633_s7  ;;  %918 = vrot.lane.b32.xlu0 %v912_v60, %s1634_s8  ;;  %v399_v53 = vadd.f32 %v397_v34, %v389_v63  ;;  %v2413_v60 = vld [vmem:[#allocation9_spill] sm:$0xff] }
 0x1cb   :  { %v415_v16 = vsel %vm352_vm10, %v413_v46, %v414_v44  ;;  %v424_v61 = vsel %vm362_vm9, %v422_v7, %v423_v0  ;;  %v2280_v2 = vsub.s32 0, %v2413_v60  ;;  %v2283_v21 = vsub.s32 1, %v2413_v60 }
 0x1cc   :  { %v431_v11 = vpop.permute.xlu0 %430  ;;  %v408_v48 = vadd.f32 %v406_v37, %v399_v53  ;;  %v440_v6 = vpop.permute.xlu1 %439  ;;  %vm1197_vm9 = vcmp.lt.s32.totalorder %v321_v5, 14  ;;  %vm1354_vm10 = vcmp.lt.s32.totalorder %v321_v5, 13 }
 0x1cd   :  { %v432_v28 = vrot.slane %v431_v11, 2  ;;  %v441_v38 = vrot.slane %v440_v6, 2  ;;  %v588_v25 = vrot.slane %v584_v41, %v2280_v2  ;;  %v749_v30 = vrot.slane %v741_v27, %v2283_v21 }
 0x1ce   :  { %916 = vrot.lane.b32.xlu1 %v913_v33, %s1634_s8  ;;  %1071 = vrot.lane.b32.xlu0 %v1068_v40, %s1635_s9  ;;  %v417_v10 = vadd.f32 %v415_v16, %v408_v48  ;;  %v745_v45 = vrot.slane %v741_v27, %v2280_v2  ;;  %v1045_v22 = vrot.slane %v1041_v35, %v2280_v2  ;;  %v1198_v31 = vsel %vm1197_vm9, 1, %v1638_v13 }
 0x1cf   :  { %v433_v52 = vsel %vm372_vm11, %v431_v11, %v432_v28  ;;  %v442_v62 = vsel %vm382_vm12, %v440_v6, %v441_v38  ;;  %vm2292_vm2 = vcmp.eq.s32.totalorder %v588_v25, 1  ;;  %vm2315_vm7 = vcmp.eq.s32.totalorder %v749_v30, 1 }
 0x1d0   :  { %v426_v17 = vadd.f32 %v424_v61, %v417_v10  ;;  %vm750_vm11 = vcmp.eq.s32.totalorder %v745_v45, 1  ;;  %vm1075_vm12 = vcmask 1014784   ;;  %v1049_v7 = vrot.slane %v1041_v35, %v2283_v21 }
 0x1d1   :  { %v1355_v37 = vsel %vm1354_vm10, 1, %v1638_v13  ;;  %vm2331_vm13 = vcmp.eq.s32.totalorder %v1045_v22, 1  ;;  %v1206_v10 = vrot.slane %v1198_v31, %v2283_v21 }
 0x1d2   :  { %1073 = vrot.lane.b32.xlu1 %v1067_v42, %s1635_s9  ;;  %1230 = vrot.lane.b32.xlu0 %v1224_v36, %s1636_s12  ;;  %v435_v58 = vadd.f32 %v433_v52, %v426_v17  ;;  %v446_v42 = vsel %vm445_vm14, 1, %v1638_v13  ;;  %v1359_v17 = vrot.slane %v1355_v37, %v2280_v2  ;;  %vm2343_vm14 = vcmp.eq.s32.totalorder %v1049_v7, 1  ;;  %v1557_v7 = vld [vmem:[%s2386_s0 + $0x8] sm:$0xff] }
 0x1d3   :  { %v1363_v13 = vrot.slane %v1355_v37, %v2283_v21  ;;  %s1560_s19 = spop %1559 }
 0x1d4   :  { %v444_v36 = vadd.f32 %v442_v62, %v435_v58  ;;  %v1401_v45 = vstv %s1560_s19 }
 0x1d6   :  { %1228 = vrot.lane.b32.xlu1 %v1225_v9, %s1636_s12  ;;  %1385 = vrot.lane.b32.xlu0 %v1382_v24, %s1637_s13  ;;  %v450_v9 = vrot.slane %v446_v42, %v2280_v2  ;;  %v454_v24 = vrot.slane %v446_v42, %v2283_v21  ;;  %v464_v50 = vrot.slane %v444_v36, %v1980_v8 }
 0x1d8   :  { %vm2299_vm3 = vcmp.eq.s32.totalorder %v450_v9, 1  ;;  %vm2303_vm4 = vcmp.eq.s32.totalorder %v454_v24, 1  ;;  %v465_v4 = vcombine.high %v464_v50, %v464_v50 }
 0x1d9   :  { %v468_v19 = vsel %vm2299_vm3, %v464_v50, 0.0  ;;  %vm2357_vm3 = vcmp.eq.s32.totalorder %v1359_v17, 1 }
 0x1da   :  { %1387 = vrot.lane.b32.xlu1 %v1381_v26, %s1637_s13  ;;  %v592_v26 = vrot.slane %v584_v41, %v2283_v21  ;;  %v469_v34 = vsel %vm2303_vm4, %v465_v4, 0.0  ;;  %vm1365_vm4 = vcmp.eq.s32.totalorder %v1363_v13, 1 }
 0x1dc   :  { %vm2308_vm5 = vcmp.eq.s32.totalorder %v592_v26, 1 }
 0x208   :  { %v613_v43 = vpop.permute.xlu0 %612 }
 0x214   :  { %v770_v39 = vpop.permute.xlu1 %769 }
 0x228   :  { %v2269_v59 = vpop.permute.xlu0 %914 }
 0x22a   :  { %v2275_v32 = vpop.permute.xlu1 %1069 }
 0x230   :  { %v2277_v49 = vpop.permute.xlu0 %1226 }
 0x234   :  { %v2286_v33 = vpop.permute.xlu1 %1383  ;;  %v617_v40 = vpop.permute.xlu0 %616 }
 0x238   :  { %v615_v56 = vpop.permute.xlu1 %614  ;;  %v772_v54 = vpop.permute.xlu0 %771 }
 0x239   :  { %v619_v12 = vsel %vm618_vm0, %v613_v43, %v615_v56  ;;  %v620_v8 = vsel %vm618_vm0, %v615_v56, %v617_v40  ;;  %v776_v18 = vsel %vm775_vm6, %v770_v39, %v772_v54  ;;  %v1202_v43 = vrot.slane %v1198_v31, %v2280_v2 }
 0x23a   :  { %v623_v23 = vsel %vm2292_vm2, %v619_v12, 0.0  ;;  %v624_v57 = vsel %vm2308_vm5, %v620_v8, 0.0  ;;  %v780_v11 = vsel %vm750_vm11, %v776_v18, 0.0  ;;  %vm1389_vm0 = vcmask 998400  }
 0x23b   :  { %v625_v20 = vadd.f32 %v623_v23, %v468_v19  ;;  %v626_v44 = vadd.f32 %v624_v57, %v469_v34  ;;  %vm1207_vm1 = vcmp.eq.s32.totalorder %v1202_v43, 1  ;;  %vm2350_vm2 = vcmp.eq.s32.totalorder %v1206_v10, 1 }
 0x23c   :  { %v774_v55 = vpop.permute.xlu1 %773  ;;  %v919_v51 = vpop.permute.xlu0 %918  ;;  %v1398_v12 = vstv %s2340_s3 }
 0x23d   :  { %v777_v29 = vsel %vm775_vm6, %v772_v54, %v774_v55  ;;  %v782_v16 = vadd.f32 %v780_v11, %v625_v20 }
 0x23e   :  { %v781_v53 = vsel %vm2315_vm7, %v777_v29, 0.0 }
 0x23f   :  { %v783_v61 = vadd.f32 %v781_v53, %v626_v44  ;;  %v1418_v53 = vld [vmem:[%s2386_s0] sm:$0xff] }
 0x240   :  { %v917_v63 = vpop.permute.xlu1 %916  ;;  %v1072_v46 = vpop.permute.xlu0 %1071 }
 0x241   :  { %v921_v48 = vsel %vm920_vm8, %v2269_v59, %v917_v63  ;;  %v1076_v6 = vsel %vm1075_vm12, %v2275_v32, %v1072_v46  ;;  %v922_v59 = vsel %vm920_vm8, %v917_v63, %v919_v51 }
 0x242   :  { %v925_v5 = vadd.f32 %v921_v48, %v782_v16  ;;  %v1080_v32 = vsel %vm2331_vm13, %v1076_v6, 0.0  ;;  %v926_v41 = vadd.f32 %v922_v59, %v783_v61 }
 0x244   :  { %v1074_v28 = vpop.permute.xlu1 %1073  ;;  %v1231_v39 = vpop.permute.xlu0 %1230  ;;  %v1082_v36 = vadd.f32 %v1080_v32, %v925_v5 }
 0x245   :  { %v1077_v52 = vsel %vm1075_vm12, %v1072_v46, %v1074_v28 }
 0x246   :  { %v1081_v60 = vsel %vm2343_vm14, %v1077_v52, 0.0 }
 0x247   :  { %v1083_v27 = vadd.f32 %v1081_v60, %v926_v41 }
 0x248   :  { %v1229_v62 = vpop.permute.xlu1 %1228  ;;  %v1386_v42 = vpop.permute.xlu0 %1385 }
 0x249   :  { %v1233_v25 = vsel %vm1232_vm15, %v2277_v49, %v1229_v62  ;;  %v1234_v9 = vsel %vm1232_vm15, %v1229_v62, %v1231_v39  ;;  %v1390_v24 = vsel %vm1389_vm0, %v2286_v33, %v1386_v42 }
 0x24a   :  { %v1237_v26 = vsel %vm1207_vm1, %v1233_v25, 0.0  ;;  %v1238_v56 = vsel %vm2350_vm2, %v1234_v9, 0.0  ;;  %v1394_v47 = vsel %vm2357_vm3, %v1390_v24, 0.0 }
 0x24b   :  { %v1239_v54 = vadd.f32 %v1237_v26, %v1082_v36  ;;  %v1240_v30 = vadd.f32 %v1238_v56, %v1083_v27 }
 0x24c   :  { %v1388_v50 = vpop.permute.xlu1 %1387 }
 0x24d   :  { %v1396_v15 = vadd.f32 %v1394_v47, %v1239_v54  ;;  %v1391_v49 = vsel %vm1389_vm0, %v1386_v42, %v1388_v50 }
 0x24e   :  { %v1395_v14 = vsel %vm1365_vm4, %v1391_v49, 0.0 }
 0x24f   :  { %v1397_v33 = vadd.f32 %v1395_v14, %v1240_v30  ;;  %v1399_v35 = vadd.f32 %v1398_v12, %v1396_v15 }
 0x251   :  { %v1400_v3 = vadd.f32 %v1398_v12, %v1397_v33  ;;  %v1402_v8 = vmul.f32 %v1401_v45, %v1399_v35 }
 0x253   :  { %v1403_v23 = vmul.f32 %v1401_v45, %v1400_v3  ;;  %v1555_v55 = vmul.f32 -1.442695, %v1402_v8 }
 0x255   :  { %1584 = vpow2.f32 %v1555_v55  ;;  %v1556_v51 = vmul.f32 -1.442695, %v1403_v23 }
 0x257   :  { %1586 = vpow2.f32 %v1556_v51 }
 0x25f   :  { %v1585_v4 = vpop.eup %1584 }
 0x260   :  { %v1410_v1 = vadd.f32 1.0, %v1585_v4 }
 0x261   :  { %v1587_v19 = vpop.eup %1586 }
 0x262   :  { %v1411_v29 = vadd.f32 1.0, %v1587_v19  ;;  %1588 = vrcp.f32 %v1410_v1 }
 0x264   :  { %1590 = vrcp.f32 %v1411_v29 }
 0x26c   :  { %v1589_v22 = vpop.eup %1588 }
 0x26d   :  { %v1416_v57 = vadd.f32 1.0, %v1589_v22 }
 0x26e   :  { %v1591_v20 = vpop.eup %1590 }
 0x26f   :  { %v1417_v18 = vadd.f32 1.0, %v1591_v20  ;;  %v1422_v63 = vrot.slane %v1416_v57, %v2280_v2  ;;  %v1437_v31 = vrot.slane %v1416_v57, %v2283_v21 }
 0x271   :  { %v1426_v46 = vrot.slane %v1417_v18, %v2280_v2  ;;  %v1441_v34 = vrot.slane %v1417_v18, %v2283_v21 }
 0x273   :  { %v1429_v37 = vcombine.low %v1422_v63, %v1426_v46  ;;  %v1444_v44 = vcombine.low %v1437_v31, %v1441_v34 }
 0x275   :  { %v1431_v11 = vmul.f32 %v1429_v37, %v1418_v53  ;;  %v1446_v48 = vmul.f32 %v1557_v7, %v1444_v44 }
 0x277   :  { %1432 = vst [vmem:[%s2390_s4] sm:$0xff] %v1431_v11  ;;  %1558 = vst [vmem:[%s2390_s4 + $0x8] sm:$0xff] %v1446_v48 }
 0x278   :  { %1453 = vsyncpa [#allocation4], 1 }
 0x279   :  { %1454 = vsyncpa [#allocation6], 1 }

</bundles_post_ra>
